<compile_context>
chip_gen: v7x
topology: tpu7x:2x2x1
jax: 0.10.0
libtpu: 0.0.40
codegen_flags: <defaults>
</compile_context>

<pallas_src>
import functools

import numpy as np
import jax
import jax.numpy as jnp
from jax import lax
from jax.experimental import pallas as pl
from jax.experimental.pallas import tpu as pltpu

MASKID = 0


# --------------------------------------------------------------------------- #
# Helpers
# --------------------------------------------------------------------------- #
def _pick_tile(n, cap=256):
    """Largest tile <= cap dividing n; prefers multiples of 256, then 128, then 8."""
    if n <= cap:
        return n
    for step in (256, 128, 8):
        t = (cap // step) * step
        while t >= step:
            if n % t == 0:
                return t
            t -= step
    # TODO(synk): prime-length sequences fall back to one full-length tile
    # (removes the VMEM bound) -- pad the sequence upstream instead.
    return n


def position_encoding_init(n_position, d_pos_vec):
    """Sinusoid position encoding table (matches the torch init exactly)."""
    pe = np.array(
        [[pos / np.power(10000.0, 2.0 * i / d_pos_vec) for i in range(d_pos_vec)]
         if pos != 0 else np.zeros(d_pos_vec)
         for pos in range(n_position)])
    pe[1:, 0::2] = np.sin(pe[1:, 0::2])
    pe[1:, 1::2] = np.cos(pe[1:, 1::2])
    return jnp.asarray(pe, jnp.float32)


# --------------------------------------------------------------------------- #
# Kernel 1: fused multi-head attention
#   QKV proj (K/V hoisted to per-batch VMEM scratch), mask, softmax, attn@V,
#   per-head out-proj accumulation, residual add, LayerNormalization,
#   for one (batch, q-tile) grid cell.
# --------------------------------------------------------------------------- #
def mha_fused_kernel(x_ref, k_ref, v_ref, wq_ref, wk_ref, wv_ref, kmask_ref,
                     wp_ref, bp_ref, gain_ref, bias_ref, out_ref, *rest,
                     n_head, d_k, d_v, inv_scale, causal, ln_eps, compute_dtype):
    if len(rest) == 3:
        attn_ref, k_scr, v_scr = rest
    else:
        attn_ref = None
        k_scr, v_scr = rest

    cdt = compute_dtype
    x = x_ref[0]                                  # (tq, d_model) -- also residual
    tq, d_model = x.shape

    # K/V projections: computed once per batch element (first q-tile) and kept
    # resident in VMEM scratch across q-tiles (q grid axis is "arbitrary").
    @pl.when(pl.program_id(1) == 0)
    def _():
        k_scr[...] = jnp.dot(k_ref[0].astype(cdt), wk_ref[...],
                             preferred_element_type=jnp.float32).astype(cdt)
        v_scr[...] = jnp.dot(v_ref[0].astype(cdt), wv_ref[...],
                             preferred_element_type=jnp.float32).astype(cdt)

    # Full-width Q projection for ALL heads (fills the MXU columns, bf16 inputs).
    q_all = jnp.dot(x.astype(cdt), wq_ref[...],
                    preferred_element_type=jnp.float32).astype(cdt)   # (tq, H*dk)
    k_all = k_scr[...]                                                # (lk, H*dk)
    v_all = v_scr[...]                                                # (lk, H*dv)
    len_k = k_all.shape[0]

    # Mask: 2-D key-padding mask broadcast over q; causal mask built in-kernel
    # with iota (no dense (mb, len_q, len_k) float mask is DMA'd).
    keep = jnp.broadcast_to(kmask_ref[0] > 0.0, (tq, len_k))
    if causal:
        q_idx = (pl.program_id(1) * tq
                 + lax.broadcasted_iota(jnp.int32, (tq, len_k), 0))
        k_idx = lax.broadcasted_iota(jnp.int32, (tq, len_k), 1)
        keep = jnp.logical_and(keep, k_idx <= q_idx)

    dn = (((1,), (1,)), ((), ()))      # contract d_k of both operands (no k^T copy)
    proj = jnp.zeros((tq, d_model), jnp.float32)
    for h in range(n_head):
        q_h = q_all[:, h * d_k:(h + 1) * d_k]
        k_h = k_all[:, h * d_k:(h + 1) * d_k]
        v_h = v_all[:, h * d_v:(h + 1) * d_v]

        s = lax.dot_general(q_h, k_h, dn,
                            preferred_element_type=jnp.float32) * inv_scale
        s = jnp.where(keep, s, -1e30)

        m = jnp.max(s, axis=-1, keepdims=True)
        e = jnp.exp(s - m)
        # Exact divide: pl.reciprocal(approx=True) broke 1e-3 parity last time.
        attn = e / jnp.sum(e, axis=-1, keepdims=True)
        if attn_ref is not None:
            attn_ref[h, 0, :, :] = attn

        ctx = jnp.dot(attn.astype(cdt), v_h, preferred_element_type=jnp.float32)
        # Per-head output-projection accumulation: no concat relayout, ctx_h is
        # consumed immediately (short live ranges).
        proj = proj + jnp.dot(ctx.astype(cdt),
                              wp_ref[h * d_v:(h + 1) * d_v, :],
                              preferred_element_type=jnp.float32)

    # bias + residual + LayerNormalization (one-pass mean/var, f32 epilogue).
    z = proj + bp_ref[...] + x.astype(jnp.float32)
    d = z.shape[-1]
    s1 = jnp.sum(z, axis=-1, keepdims=True)
    s2 = jnp.sum(z * z, axis=-1, keepdims=True)
    mu = s1 / d
    # torch.std defaults to the unbiased estimator (ddof = 1); eps added to sigma.
    var = jnp.maximum(s2 - s1 * mu, 0.0) / (d - 1)
    sigma = jnp.sqrt(var)
    out_ref[0] = (gain_ref[...] * (z - mu) / (sigma + ln_eps)
                  + bias_ref[...]).astype(out_ref.dtype)


def mha_forward(x, k, v, key_mask, p, *, n_head, d_k, d_v, causal,
                ln_eps=1e-3, compute_dtype=jnp.bfloat16, return_attn=False,
                max_q_tile=256):
    """MultiHeadAttention forward. key_mask: (mb, len_k), 1 = keep, 0 = masked."""
    mb, len_q, d_model = x.shape
    _, len_k, _ = k.shape
    tq = _pick_tile(len_q, max_q_tile)      # bounds per-step VMEM for long seq
    nq = len_q // tq
    inv_scale = 1.0 / (float(d_model) ** 0.5)   # module uses scale = d_model**0.5
    cdt = compute_dtype

    kmask = key_mask.astype(jnp.float32).reshape(mb, 1, len_k)

    kern = functools.partial(mha_fused_kernel, n_head=n_head, d_k=d_k, d_v=d_v,
                             inv_scale=inv_scale, causal=causal, ln_eps=ln_eps,
                             compute_dtype=cdt)

    out_shape = jax.ShapeDtypeStruct((mb, len_q, d_model), x.dtype)
    out_spec = pl.BlockSpec((1, tq, d_model), lambda b, qi: (b, qi, 0))
    if return_attn:
        out_shape = (out_shape,
                     jax.ShapeDtypeStruct((n_head, mb, len_q, len_k), jnp.float32))
        out_spec = (out_spec,
                    pl.BlockSpec((n_head, 1, tq, len_k),
                                 lambda b, qi: (0, b, qi, 0)))

    res = pl.pallas_call(
        kern,
        out_shape=out_shape,
        grid=(mb, nq),
        in_specs=[
            pl.BlockSpec((1, tq, d_model), lambda b, qi: (b, qi, 0)),     # x / residual
            pl.BlockSpec((1, len_k, d_model), lambda b, qi: (b, 0, 0)),   # k (resident over qi)
            pl.BlockSpec((1, len_k, d_model), lambda b, qi: (b, 0, 0)),   # v (resident over qi)
            pl.BlockSpec((d_model, n_head * d_k), lambda b, qi: (0, 0)),  # w_qs (resident)
            pl.BlockSpec((d_model, n_head * d_k), lambda b, qi: (0, 0)),  # w_ks
            pl.BlockSpec((d_model, n_head * d_v), lambda b, qi: (0, 0)),  # w_vs
            pl.BlockSpec((1, 1, len_k), lambda b, qi: (b, 0, 0)),         # key mask (2-D)
            pl.BlockSpec((n_head * d_v, d_model), lambda b, qi: (0, 0)),  # w_proj
            pl.BlockSpec((1, d_model), lambda b, qi: (0, 0)),             # b_proj
            pl.BlockSpec((1, d_model), lambda b, qi: (0, 0)),             # ln gain
            pl.BlockSpec((1, d_model), lambda b, qi: (0, 0)),             # ln bias
        ],
        out_specs=out_spec,
        scratch_shapes=[pltpu.VMEM((len_k, n_head * d_k), cdt),   # K proj (per batch)
                        pltpu.VMEM((len_k, n_head * d_v), cdt)],  # V proj (per batch)
        compiler_params=pltpu.CompilerParams(
            dimension_semantics=("parallel", "arbitrary")),
    )(x, k, v,
      p["w_qs"].astype(cdt), p["w_ks"].astype(cdt), p["w_vs"].astype(cdt),
      kmask,
      p["w_proj"].astype(cdt), p["b_proj"].reshape(1, -1),
      p["ln_gain"].reshape(1, -1), p["ln_bias"].reshape(1, -1))

    if return_attn:
        out, attn4 = res
        # torch layout: (n_head * mb, len_q, len_k), index = h * mb + b
        return out, attn4.reshape(n_head * mb, len_q, len_k)
    return res, None


# --------------------------------------------------------------------------- #
# Kernel 2: position-wise feed-forward + residual + LayerNormalization
#   (row-tiled; bf16 weights stay resident across row tiles).
# --------------------------------------------------------------------------- #
def ffn_ln_kernel(x_ref, w1_ref, b1_ref, w2_ref, b2_ref, gain_ref, bias_ref,
                  out_ref, *, eps, compute_dtype):
    cdt = compute_dtype
    x = x_ref[...]                                               # (tm, d_model)
    h = jnp.dot(x.astype(cdt), w1_ref[...],
                preferred_element_type=jnp.float32) + b1_ref[...]
    h = jnp.maximum(h, 0.0)
    y = jnp.dot(h.astype(cdt), w2_ref[...],
                preferred_element_type=jnp.float32) + b2_ref[...]
    z = y + x.astype(jnp.float32)
    d = z.shape[-1]
    s1 = jnp.sum(z, axis=-1, keepdims=True)
    s2 = jnp.sum(z * z, axis=-1, keepdims=True)
    mu = s1 / d
    var = jnp.maximum(s2 - s1 * mu, 0.0) / (d - 1)
    sigma = jnp.sqrt(var)
    out_ref[...] = (gain_ref[...] * (z - mu) / (sigma + eps)
                    + bias_ref[...]).astype(out_ref.dtype)


def ffn_forward(x, p, *, ln_eps=1e-3, compute_dtype=jnp.bfloat16, max_row_tile=256):
    mb, len_q, d_model = x.shape
    rows = mb * len_q
    d_inner = p["w1"].shape[1]
    cdt = compute_dtype
    x2 = x.reshape(rows, d_model)
    tm = _pick_tile(rows, max_row_tile)

    out = pl.pallas_call(
        functools.partial(ffn_ln_kernel, eps=ln_eps, compute_dtype=cdt),
        out_shape=jax.ShapeDtypeStruct((rows, d_model), x.dtype),
        grid=(rows // tm,),
        in_specs=[
            pl.BlockSpec((tm, d_model), lambda i: (i, 0)),       # x / residual (tiled)
            pl.BlockSpec((d_model, d_inner), lambda i: (0, 0)),  # w1 (resident, bf16)
            pl.BlockSpec((1, d_inner), lambda i: (0, 0)),        # b1
            pl.BlockSpec((d_inner, d_model), lambda i: (0, 0)),  # w2 (resident, bf16)
            pl.BlockSpec((1, d_model), lambda i: (0, 0)),        # b2
            pl.BlockSpec((1, d_model), lambda i: (0, 0)),        # ln gain
            pl.BlockSpec((1, d_model), lambda i: (0, 0)),        # ln bias
        ],
        out_specs=pl.BlockSpec((tm, d_model), lambda i: (i, 0)),
        compiler_params=pltpu.CompilerParams(dimension_semantics=("parallel",)),
    )(x2, p["w1"].astype(cdt), p["b1"].reshape(1, -1), p["w2"].astype(cdt),
      p["b2"].reshape(1, -1), p["ln_gain"].reshape(1, -1),
      p["ln_bias"].reshape(1, -1))
    return out.reshape(mb, len_q, d_model)


# --------------------------------------------------------------------------- #
# Decoder forward
# --------------------------------------------------------------------------- #
def decoder_forward(tgt_seq, src_enc, params, *, n_head, d_k, d_v,
                    src_mask=None, ln_eps=1e-3, compute_dtype=jnp.bfloat16):
    mb, len_t = tgt_seq.shape

    # target word embedding (external module modeled as a lookup) + padding mask
    dec_emb = jnp.take(params["tgt_emb"], tgt_seq, axis=0)       # (mb, len_t, d_word)
    dec_key_mask = (tgt_seq != MASKID).astype(jnp.float32)       # (mb, len_t)

    # sinusoid position encoding, cat_pos_enc=True -> concat on the feature dim
    tgt_pos = jnp.broadcast_to(jnp.arange(len_t, dtype=jnp.int32)[None, :],
                               (mb, len_t))
    pos_emb = jnp.take(params["pos_enc"], tgt_pos, axis=0)       # (mb, len_t, d_pos)
    dec_input = jnp.concatenate([dec_emb, pos_emb], axis=2)      # (mb, len_t, d_model)

    if src_mask is None:
        src_key_mask = jnp.ones((mb, src_enc.shape[1]), jnp.float32)
    else:
        src_key_mask = src_mask.astype(jnp.float32)

    # Inter-kernel activations stay in compute_dtype (bf16) -> halves the
    # per-layer HBM round-trip traffic (dominant on v5e once matmuls are bf16).
    dec_output = dec_input.astype(compute_dtype)
    src_enc_c = src_enc.astype(compute_dtype)
    for lp in params["layers"]:
        # masked self attention (key-padding mask AND subsequent/causal mask)
        dec_output, _ = mha_forward(dec_output, dec_output, dec_output,
                                    dec_key_mask, lp["slf"], n_head=n_head,
                                    d_k=d_k, d_v=d_v, causal=True, ln_eps=ln_eps,
                                    compute_dtype=compute_dtype)
        # encoder-decoder attention (source key-padding mask only)
        dec_output, _ = mha_forward(dec_output, src_enc_c, src_enc_c,
                                    src_key_mask, lp["enc"], n_head=n_head,
                                    d_k=d_k, d_v=d_v, causal=False, ln_eps=ln_eps,
                                    compute_dtype=compute_dtype)
        # position-wise feed forward
        dec_output = ffn_forward(dec_output, lp["ffn"], ln_eps=ln_eps,
                                 compute_dtype=compute_dtype)
    return dec_output.astype(jnp.float32)


# --------------------------------------------------------------------------- #
# Deterministic parameter init (mirrors the PyTorch parameter shapes, f32 master)
# --------------------------------------------------------------------------- #
def init_params(key, *, n_layers, n_head, d_k, d_v, d_model, d_inner,
                d_word, d_pos, vocab, n_max_seq):
    def xavier(k, shape):
        std = (2.0 / (shape[0] + shape[1])) ** 0.5
        return std * jax.random.normal(k, shape, jnp.float32)

    keys = jax.random.split(key, 1 + n_layers)
    tgt_emb = 0.1 * jax.random.normal(keys[0], (vocab, d_word), jnp.float32)

    layers = []
    for l in range(n_layers):
        lk = jax.random.split(keys[1 + l], 10)

        def mha_p(ks):
            return dict(
                w_qs=xavier(ks[0], (d_model, n_head * d_k)),
                w_ks=xavier(ks[1], (d_model, n_head * d_k)),
                w_vs=xavier(ks[2], (d_model, n_head * d_v)),
                w_proj=xavier(ks[3], (n_head * d_v, d_model)),   # stored (in, out)
                b_proj=jnp.zeros((d_model,), jnp.float32),
                ln_gain=jnp.ones((d_model,), jnp.float32),
                ln_bias=jnp.zeros((d_model,), jnp.float32))

        ffn = dict(
            w1=xavier(lk[8], (d_model, d_inner)),
            b1=jnp.zeros((d_inner,), jnp.float32),
            w2=xavier(lk[9], (d_inner, d_model)),
            b2=jnp.zeros((d_model,), jnp.float32),
            ln_gain=jnp.ones((d_model,), jnp.float32),
            ln_bias=jnp.zeros((d_model,), jnp.float32))
        layers.append(dict(slf=mha_p(lk[0:4]), enc=mha_p(lk[4:8]), ffn=ffn))

    return dict(tgt_emb=tgt_emb,
                pos_enc=position_encoding_init(n_max_seq + 1, d_pos),
                layers=layers)


# --------------------------------------------------------------------------- #
# Pure-JAX reference (same math & same compute-dtype casts) for correctness check
# --------------------------------------------------------------------------- #
def _ref_layernorm(z, gain, bias, eps):
    d = z.shape[-1]
    mu = jnp.mean(z, axis=-1, keepdims=True)
    sigma = jnp.sqrt(jnp.sum((z - mu) ** 2, axis=-1, keepdims=True) / (d - 1))
    return gain * (z - mu) / (sigma + eps) + bias


def _ref_mm(a, b, cdt):
    # HIGHEST precision so the f32 reference is not degraded by XLA's default
    # (reduced precision) f32 matmul path; bf16 inputs are unaffected.
    return jnp.einsum("...i,ij->...j", a.astype(cdt), b.astype(cdt),
                      preferred_element_type=jnp.float32,
                      precision=lax.Precision.HIGHEST)


def _ref_mha(x, k, v, mask3, p, n_head, d_k, d_v, ln_eps, cdt):
    mb, len_q, d_model = x.shape
    _, len_k, _ = k.shape
    inv_scale = 1.0 / (float(d_model) ** 0.5)
    qh = _ref_mm(x, p["w_qs"], cdt).astype(cdt).reshape(mb, len_q, n_head, d_k)
    kh = _ref_mm(k, p["w_ks"], cdt).astype(cdt).reshape(mb, len_k, n_head, d_k)
    vh = _ref_mm(v, p["w_vs"], cdt).astype(cdt).reshape(mb, len_k, n_head, d_v)
    scores = jnp.einsum("bqhe,bkhe->bhqk", qh, kh,
                        preferred_element_type=jnp.float32,
                        precision=lax.Precision.HIGHEST) * inv_scale
    scores = jnp.where(mask3[:, None] > 0, scores, -1e30)
    attn = jax.nn.softmax(scores, axis=-1)
    ctx = jnp.einsum("bhqk,bkhe->bqhe", attn.astype(cdt), vh,
                     preferred_element_type=jnp.float32,
                     precision=lax.Precision.HIGHEST)
    ctx = ctx.reshape(mb, len_q, n_head * d_v)
    z = _ref_mm(ctx, p["w_proj"], cdt) + p["b_proj"] + x.astype(jnp.float32)
    return _ref_layernorm(z, p["ln_gain"], p["ln_bias"], ln_eps)


def _ref_ffn(x, p, eps, cdt):
    h = jnp.maximum(_ref_mm(x, p["w1"], cdt) + p["b1"], 0.0)
    y = _ref_mm(h, p["w2"], cdt) + p["b2"]
    return _ref_layernorm(y + x.astype(jnp.float32), p["ln_gain"], p["ln_bias"], eps)


def ref_decoder(tgt_seq, src_enc, params, *, n_head, d_k, d_v, src_mask=None,
                ln_eps=1e-3, compute_dtype=jnp.bfloat16):
    mb, len_t = tgt_seq.shape
    dec_emb = params["tgt_emb"][tgt_seq]
    dec_key_mask = (tgt_seq != MASKID).astype(jnp.float32)
    pos = jnp.broadcast_to(jnp.arange(len_t)[None, :], (mb, len_t))
    pos_emb = params["pos_enc"][pos]
    out = jnp.concatenate([dec_emb, pos_emb], axis=2).astype(compute_dtype)
    src_enc_c = src_enc.astype(compute_dtype)

    sub_keep = (jnp.arange(len_t)[None, :] <= jnp.arange(len_t)[:, None]
                ).astype(jnp.float32)
    slf_mask3 = dec_key_mask[:, None, :] * sub_keep[None]
    if src_mask is None:
        src_key = jnp.ones((mb, src_enc.shape[1]), jnp.float32)
    else:
        src_key = src_mask.astype(jnp.float32)
    enc_mask3 = jnp.broadcast_to(src_key[:, None, :],
                                 (mb, len_t, src_enc.shape[1]))

    for lp in params["layers"]:
        out = _ref_mha(out, out, out, slf_mask3, lp["slf"], n_head, d_k, d_v,
                       ln_eps, compute_dtype).astype(compute_dtype)
        out = _ref_mha(out, src_enc_c, src_enc_c, enc_mask3, lp["enc"], n_head,
                       d_k, d_v, ln_eps, compute_dtype).astype(compute_dtype)
        out = _ref_ffn(out, lp["ffn"], ln_eps, compute_dtype).astype(compute_dtype)
    return out.astype(jnp.float32)


# --------------------------------------------------------------------------- #
if __name__ == "__main__":
    n_layers, n_head, d_k, d_v = 2, 4, 8, 8
    d_word, d_pos = 20, 12
    d_model = d_word + d_pos                 # cat_pos_enc=True
    d_inner = 64
    vocab, n_max_seq = 11, 16
    mb, len_t, len_src = 2, 8, 8

    key = jax.random.PRNGKey(0)
    kp, kt, ke = jax.random.split(key, 3)
    params = init_params(kp, n_layers=n_layers, n_head=n_head, d_k=d_k, d_v=d_v,
                         d_model=d_model, d_inner=d_inner, d_word=d_word,
                         d_pos=d_pos, vocab=vocab, n_max_seq=n_max_seq)

    tgt_seq = jax.random.randint(kt, (mb, len_t), 1, vocab)
    tgt_seq = tgt_seq.at[1, -1].set(MASKID)            # exercise the padding mask
    src_enc = jax.random.normal(ke, (mb, len_src, d_model), jnp.float32)
    src_mask = jnp.ones((mb, len_src), jnp.int32)

    # 1) Structural / numerical check in full f32 compute.
    #    Tolerance covers residual MXU f32 pass-count differences between the
    #    Pallas kernel and the XLA reference; structural bugs are O(0.1+).
    out32 = decoder_forward(tgt_seq, src_enc, params, n_head=n_head, d_k=d_k,
                            d_v=d_v, src_mask=src_mask,
                            compute_dtype=jnp.float32)
    out32 = jax.block_until_ready(out32)
    ref32 = ref_decoder(tgt_seq, src_enc, params, n_head=n_head, d_k=d_k,
                        d_v=d_v, src_mask=src_mask, compute_dtype=jnp.float32)
    assert out32.shape == (mb, len_t, d_model)
    assert bool(jnp.all(jnp.isfinite(out32)))
    err32 = float(jnp.max(jnp.abs(out32 - ref32)))
    assert err32 < 2e-2, err32

    # 2) bf16 performance path (MXU-native) vs a matching bf16-cast reference.
    outbf = decoder_forward(tgt_seq, src_enc, params, n_head=n_head, d_k=d_k,
                            d_v=d_v, src_mask=src_mask,
                            compute_dtype=jnp.bfloat16)
    outbf = jax.block_until_ready(outbf)
    refbf = ref_decoder(tgt_seq, src_enc, params, n_head=n_head, d_k=d_k,
                        d_v=d_v, src_mask=src_mask, compute_dtype=jnp.bfloat16)
    assert bool(jnp.all(jnp.isfinite(outbf)))
    errbf = float(jnp.max(jnp.abs(outbf - refbf)))
    assert errbf < 1e-1, errbf

    # 3) Exercise the optional attention-map output path of the MHA kernel (f32).
    key_mask = jnp.ones((mb, len_src), jnp.float32)
    o1, attns = mha_forward(src_enc, src_enc, src_enc, key_mask,
                            params["layers"][0]["slf"], n_head=n_head, d_k=d_k,
                            d_v=d_v, causal=True, compute_dtype=jnp.float32,
                            return_attn=True)
    o2, _ = mha_forward(src_enc, src_enc, src_enc, key_mask,
                        params["layers"][0]["slf"], n_head=n_head, d_k=d_k,
                        d_v=d_v, causal=True, compute_dtype=jnp.float32,
                        return_attn=False)
    o1, o2, attns = map(jax.block_until_ready, (o1, o2, attns))
    assert attns.shape == (n_head * mb, len_src, len_src)
    assert jnp.allclose(jnp.sum(attns, axis=-1), 1.0, atol=1e-3)
    assert float(jnp.max(jnp.abs(jnp.triu(attns, k=1)))) < 1e-6   # causal
    assert jnp.allclose(o1, o2, atol=1e-5, rtol=1e-5)

    print("KERNEL_OK")
</pallas_src>

<mosaic_0001>
module attributes {stable_mosaic.version = 11 : i64} {
  func.func @mha_fused_kernel(%arg0: i32, %arg1: i32, %arg2: memref<1x8x32xf32, #tpu.memory_space<vmem>>, %arg3: memref<1x8x32xf32, #tpu.memory_space<vmem>>, %arg4: memref<1x8x32xf32, #tpu.memory_space<vmem>>, %arg5: memref<32x32xf32, #tpu.memory_space<vmem>>, %arg6: memref<32x32xf32, #tpu.memory_space<vmem>>, %arg7: memref<32x32xf32, #tpu.memory_space<vmem>>, %arg8: memref<1x1x8xf32, #tpu.memory_space<vmem>>, %arg9: memref<32x32xf32, #tpu.memory_space<vmem>>, %arg10: memref<1x32xf32, #tpu.memory_space<vmem>>, %arg11: memref<1x32xf32, #tpu.memory_space<vmem>>, %arg12: memref<1x32xf32, #tpu.memory_space<vmem>>, %arg13: memref<1x8x32xf32, #tpu.memory_space<vmem>>, %arg14: memref<8x32xf32, #tpu.memory_space<vmem>>, %arg15: memref<8x32xf32, #tpu.memory_space<vmem>>) attributes {dimension_semantics = [#tpu.dimension_semantics<parallel>, #tpu.dimension_semantics<arbitrary>], iteration_bounds = array<i64: 2, 1>, scalar_prefetch = 0 : i64, scratch_operands = 2 : i64, tpu.core_type = #tpu.core_type<tc>, window_params = [{transform_indices = @transform_0, window_bounds = array<i64: 1, 8, 32>}, {transform_indices = @transform_1, window_bounds = array<i64: 1, 8, 32>}, {transform_indices = @transform_2, window_bounds = array<i64: 1, 8, 32>}, {pipeline_mode = #tpu.pipeline_mode<synchronous>, transform_indices = @transform_3, window_bounds = array<i64: 32, 32>}, {pipeline_mode = #tpu.pipeline_mode<synchronous>, transform_indices = @transform_4, window_bounds = array<i64: 32, 32>}, {pipeline_mode = #tpu.pipeline_mode<synchronous>, transform_indices = @transform_5, window_bounds = array<i64: 32, 32>}, {transform_indices = @transform_6, window_bounds = array<i64: 1, 1, 8>}, {pipeline_mode = #tpu.pipeline_mode<synchronous>, transform_indices = @transform_7, window_bounds = array<i64: 32, 32>}, {pipeline_mode = #tpu.pipeline_mode<synchronous>, transform_indices = @transform_8, window_bounds = array<i64: 1, 32>}, {pipeline_mode = #tpu.pipeline_mode<synchronous>, transform_indices = @transform_9, window_bounds = array<i64: 1, 32>}, {pipeline_mode = #tpu.pipeline_mode<synchronous>, transform_indices = @transform_10, window_bounds = array<i64: 1, 32>}, {transform_indices = @transform_11, window_bounds = array<i64: 1, 8, 32>}]} {
    %c0 = arith.constant 0 : index
    %c0_0 = arith.constant 0 : index
    %c0_1 = arith.constant 0 : index
    %0 = vector.load %arg2[%c0, %c0_0, %c0_1] : memref<1x8x32xf32, #tpu.memory_space<vmem>>, vector<1x8x32xf32>
    %1 = vector.shape_cast %0 : vector<1x8x32xf32> to vector<8x32xf32>
    %c0_i32 = arith.constant 0 : i32
    %2 = arith.cmpi eq, %arg1, %c0_i32 : i32
    %3 = arith.extui %2 : i1 to i32
    %c0_i32_2 = arith.constant 0 : i32
    %4 = arith.cmpi ne, %3, %c0_i32_2 : i32
    scf.if %4 {
      %c0_62 = arith.constant 0 : index
      %c0_63 = arith.constant 0 : index
      %c0_64 = arith.constant 0 : index
      %140 = vector.load %arg3[%c0_62, %c0_63, %c0_64] : memref<1x8x32xf32, #tpu.memory_space<vmem>>, vector<1x8x32xf32>
      %141 = vector.shape_cast %140 : vector<1x8x32xf32> to vector<8x32xf32>
      %c0_65 = arith.constant 0 : index
      %c0_66 = arith.constant 0 : index
      %142 = vector.load %arg6[%c0_65, %c0_66] : memref<32x32xf32, #tpu.memory_space<vmem>>, vector<32x32xf32>
      %cst_67 = arith.constant dense<0.000000e+00> : vector<8x32xf32>
      %143 = tpu.matmul %141, %142, %cst_67 {dimension_numbers = #tpu.dot_dimension_numbers<[1], [0], [0], [1], [0, 0, 1, 1], [], []>} : vector<8x32xf32>, vector<32x32xf32>, vector<8x32xf32> -> vector<8x32xf32>
      %c0_68 = arith.constant 0 : index
      %c0_69 = arith.constant 0 : index
      %144 = vector.load %arg14[%c0_68, %c0_69] : memref<8x32xf32, #tpu.memory_space<vmem>>, vector<8x32xf32>
      tpu.vector_store %arg14[%c0_68, %c0_69], %143 {strides = array<i32>} : memref<8x32xf32, #tpu.memory_space<vmem>>, vector<8x32xf32>,
      %c0_70 = arith.constant 0 : index
      %c0_71 = arith.constant 0 : index
      %c0_72 = arith.constant 0 : index
      %145 = vector.load %arg4[%c0_70, %c0_71, %c0_72] : memref<1x8x32xf32, #tpu.memory_space<vmem>>, vector<1x8x32xf32>
      %146 = vector.shape_cast %145 : vector<1x8x32xf32> to vector<8x32xf32>
      %c0_73 = arith.constant 0 : index
      %c0_74 = arith.constant 0 : index
      %147 = vector.load %arg7[%c0_73, %c0_74] : memref<32x32xf32, #tpu.memory_space<vmem>>, vector<32x32xf32>
      %cst_75 = arith.constant dense<0.000000e+00> : vector<8x32xf32>
      %148 = tpu.matmul %146, %147, %cst_75 {dimension_numbers = #tpu.dot_dimension_numbers<[1], [0], [0], [1], [0, 0, 1, 1], [], []>} : vector<8x32xf32>, vector<32x32xf32>, vector<8x32xf32> -> vector<8x32xf32>
      %c0_76 = arith.constant 0 : index
      %c0_77 = arith.constant 0 : index
      %149 = vector.load %arg15[%c0_76, %c0_77] : memref<8x32xf32, #tpu.memory_space<vmem>>, vector<8x32xf32>
      tpu.vector_store %arg15[%c0_76, %c0_77], %148 {strides = array<i32>} : memref<8x32xf32, #tpu.memory_space<vmem>>, vector<8x32xf32>,
    } else {
    }
    %c0_3 = arith.constant 0 : index
    %c0_4 = arith.constant 0 : index
    %5 = vector.load %arg5[%c0_3, %c0_4] : memref<32x32xf32, #tpu.memory_space<vmem>>, vector<32x32xf32>
    %cst = arith.constant dense<0.000000e+00> : vector<8x32xf32>
    %6 = tpu.matmul %1, %5, %cst {dimension_numbers = #tpu.dot_dimension_numbers<[1], [0], [0], [1], [0, 0, 1, 1], [], []>} : vector<8x32xf32>, vector<32x32xf32>, vector<8x32xf32> -> vector<8x32xf32>
    %c0_5 = arith.constant 0 : index
    %c0_6 = arith.constant 0 : index
    %7 = vector.load %arg14[%c0_5, %c0_6] : memref<8x32xf32, #tpu.memory_space<vmem>>, vector<8x32xf32>
    %c0_7 = arith.constant 0 : index
    %c0_8 = arith.constant 0 : index
    %8 = vector.load %arg15[%c0_7, %c0_8] : memref<8x32xf32, #tpu.memory_space<vmem>>, vector<8x32xf32>
    %c0_9 = arith.constant 0 : index
    %c0_10 = arith.constant 0 : index
    %c0_11 = arith.constant 0 : index
    %9 = vector.load %arg8[%c0_9, %c0_10, %c0_11] : memref<1x1x8xf32, #tpu.memory_space<vmem>>, vector<1x1x8xf32>
    %10 = vector.shape_cast %9 : vector<1x1x8xf32> to vector<1x8xf32>
    %cst_12 = arith.constant 0.000000e+00 : f32
    %11 = vector.broadcast %cst_12 : f32 to vector<1x8xf32>
    %12 = arith.cmpf ogt, %10, %11 : vector<1x8xf32>
    %13 = vector.shape_cast %12 : vector<1x8xi1> to vector<1x8xi1>
    %14 = vector.broadcast %13 : vector<1x8xi1> to vector<8x8xi1>
    %c8_i32 = arith.constant 8 : i32
    %15 = arith.muli %arg1, %c8_i32 : i32
    %16 = tpu.iota {dimensions = array<i32: 0>} : vector<8x8xi32>
    %17 = vector.broadcast %15 : i32 to vector<8x8xi32>
    %18 = arith.addi %17, %16 : vector<8x8xi32>
    %19 = tpu.iota {dimensions = array<i32: 1>} : vector<8x8xi32>
    %20 = arith.cmpi sle, %19, %18 : vector<8x8xi32>
    %21 = arith.andi %14, %20 : vector<8x8xi1>
    %cst_13 = arith.constant 0.000000e+00 : f32
    %22 = vector.broadcast %cst_13 : f32 to vector<8x32xf32>
    %23 = vector.extract_strided_slice %6 {offsets = [0, 0], sizes = [8, 8], strides = [1, 1]} : vector<8x32xf32> to vector<8x8xf32>
    %24 = vector.extract_strided_slice %7 {offsets = [0, 0], sizes = [8, 8], strides = [1, 1]} : vector<8x32xf32> to vector<8x8xf32>
    %25 = vector.extract_strided_slice %8 {offsets = [0, 0], sizes = [8, 8], strides = [1, 1]} : vector<8x32xf32> to vector<8x8xf32>
    %cst_14 = arith.constant dense<0.000000e+00> : vector<8x8xf32>
    %26 = tpu.matmul %23, %24, %cst_14 {dimension_numbers = #tpu.dot_dimension_numbers<[1], [1], [0], [0], [0, 0, 1, 0], [], []>} : vector<8x8xf32>, vector<8x8xf32>, vector<8x8xf32> -> vector<8x8xf32>
    %cst_15 = arith.constant 0.176776692 : f32
    %27 = vector.broadcast %cst_15 : f32 to vector<8x8xf32>
    %28 = arith.mulf %26, %27 : vector<8x8xf32>
    %cst_16 = arith.constant -1.000000e+30 : f32
    %29 = vector.broadcast %cst_16 : f32 to vector<8x8xf32>
    %30 = arith.select %21, %28, %29 : vector<8x8xi1>, vector<8x8xf32>
    %cst_17 = arith.constant dense<0xFF800000> : vector<8xf32>
    %31 = vector.multi_reduction <maximumf>, %30, %cst_17 [1] : vector<8x8xf32> to vector<8xf32>
    %32 = vector.shape_cast %31 : vector<8xf32> to vector<8x1xf32>
    %33 = vector.broadcast %32 : vector<8x1xf32> to vector<8x8xf32>
    %34 = arith.subf %30, %33 : vector<8x8xf32>
    %35 = math.exp %34 : vector<8x8xf32>
    %cst_18 = arith.constant dense<0.000000e+00> : vector<8xf32>
    %36 = vector.multi_reduction <add>, %35, %cst_18 [1] : vector<8x8xf32> to vector<8xf32>
    %37 = vector.shape_cast %36 : vector<8xf32> to vector<8x1xf32>
    %38 = vector.broadcast %37 : vector<8x1xf32> to vector<8x8xf32>
    %39 = arith.divf %35, %38 : vector<8x8xf32>
    %cst_19 = arith.constant dense<0.000000e+00> : vector<8x8xf32>
    %40 = tpu.matmul %39, %25, %cst_19 {dimension_numbers = #tpu.dot_dimension_numbers<[1], [0], [0], [1], [0, 0, 1, 1], [], []>} : vector<8x8xf32>, vector<8x8xf32>, vector<8x8xf32> -> vector<8x8xf32>
    %c0_20 = arith.constant 0 : index
    %c0_21 = arith.constant 0 : index
    %41 = vector.load %arg9[%c0_20, %c0_21] : memref<32x32xf32, #tpu.memory_space<vmem>>, vector<8x32xf32>
    %cst_22 = arith.constant dense<0.000000e+00> : vector<8x32xf32>
    %42 = tpu.matmul %40, %41, %cst_22 {dimension_numbers = #tpu.dot_dimension_numbers<[1], [0], [0], [1], [0, 0, 1, 1], [], []>} : vector<8x8xf32>, vector<8x32xf32>, vector<8x32xf32> -> vector<8x32xf32>
    %43 = arith.addf %22, %42 : vector<8x32xf32>
    %44 = vector.extract_strided_slice %6 {offsets = [0, 8], sizes = [8, 8], strides = [1, 1]} : vector<8x32xf32> to vector<8x8xf32>
    %45 = vector.extract_strided_slice %7 {offsets = [0, 8], sizes = [8, 8], strides = [1, 1]} : vector<8x32xf32> to vector<8x8xf32>
    %46 = vector.extract_strided_slice %8 {offsets = [0, 8], sizes = [8, 8], strides = [1, 1]} : vector<8x32xf32> to vector<8x8xf32>
    %cst_23 = arith.constant dense<0.000000e+00> : vector<8x8xf32>
    %47 = tpu.matmul %44, %45, %cst_23 {dimension_numbers = #tpu.dot_dimension_numbers<[1], [1], [0], [0], [0, 0, 1, 0], [], []>} : vector<8x8xf32>, vector<8x8xf32>, vector<8x8xf32> -> vector<8x8xf32>
    %cst_24 = arith.constant 0.176776692 : f32
    %48 = vector.broadcast %cst_24 : f32 to vector<8x8xf32>
    %49 = arith.mulf %47, %48 : vector<8x8xf32>
    %cst_25 = arith.constant -1.000000e+30 : f32
    %50 = vector.broadcast %cst_25 : f32 to vector<8x8xf32>
    %51 = arith.select %21, %49, %50 : vector<8x8xi1>, vector<8x8xf32>
    %cst_26 = arith.constant dense<0xFF800000> : vector<8xf32>
    %52 = vector.multi_reduction <maximumf>, %51, %cst_26 [1] : vector<8x8xf32> to vector<8xf32>
    %53 = vector.shape_cast %52 : vector<8xf32> to vector<8x1xf32>
    %54 = vector.broadcast %53 : vector<8x1xf32> to vector<8x8xf32>
    %55 = arith.subf %51, %54 : vector<8x8xf32>
    %56 = math.exp %55 : vector<8x8xf32>
    %cst_27 = arith.constant dense<0.000000e+00> : vector<8xf32>
    %57 = vector.multi_reduction <add>, %56, %cst_27 [1] : vector<8x8xf32> to vector<8xf32>
    %58 = vector.shape_cast %57 : vector<8xf32> to vector<8x1xf32>
    %59 = vector.broadcast %58 : vector<8x1xf32> to vector<8x8xf32>
    %60 = arith.divf %56, %59 : vector<8x8xf32>
    %cst_28 = arith.constant dense<0.000000e+00> : vector<8x8xf32>
    %61 = tpu.matmul %60, %46, %cst_28 {dimension_numbers = #tpu.dot_dimension_numbers<[1], [0], [0], [1], [0, 0, 1, 1], [], []>} : vector<8x8xf32>, vector<8x8xf32>, vector<8x8xf32> -> vector<8x8xf32>
    %c8 = arith.constant 8 : index
    %c0_29 = arith.constant 0 : index
    %62 = vector.load %arg9[%c8, %c0_29] : memref<32x32xf32, #tpu.memory_space<vmem>>, vector<8x32xf32>
    %cst_30 = arith.constant dense<0.000000e+00> : vector<8x32xf32>
    %63 = tpu.matmul %61, %62, %cst_30 {dimension_numbers = #tpu.dot_dimension_numbers<[1], [0], [0], [1], [0, 0, 1, 1], [], []>} : vector<8x8xf32>, vector<8x32xf32>, vector<8x32xf32> -> vector<8x32xf32>
    %64 = arith.addf %43, %63 : vector<8x32xf32>
    %65 = vector.extract_strided_slice %6 {offsets = [0, 16], sizes = [8, 8], strides = [1, 1]} : vector<8x32xf32> to vector<8x8xf32>
    %66 = vector.extract_strided_slice %7 {offsets = [0, 16], sizes = [8, 8], strides = [1, 1]} : vector<8x32xf32> to vector<8x8xf32>
    %67 = vector.extract_strided_slice %8 {offsets = [0, 16], sizes = [8, 8], strides = [1, 1]} : vector<8x32xf32> to vector<8x8xf32>
    %cst_31 = arith.constant dense<0.000000e+00> : vector<8x8xf32>
    %68 = tpu.matmul %65, %66, %cst_31 {dimension_numbers = #tpu.dot_dimension_numbers<[1], [1], [0], [0], [0, 0, 1, 0], [], []>} : vector<8x8xf32>, vector<8x8xf32>, vector<8x8xf32> -> vector<8x8xf32>
    %cst_32 = arith.constant 0.176776692 : f32
    %69 = vector.broadcast %cst_32 : f32 to vector<8x8xf32>
    %70 = arith.mulf %68, %69 : vector<8x8xf32>
    %cst_33 = arith.constant -1.000000e+30 : f32
    %71 = vector.broadcast %cst_33 : f32 to vector<8x8xf32>
    %72 = arith.select %21, %70, %71 : vector<8x8xi1>, vector<8x8xf32>
    %cst_34 = arith.constant dense<0xFF800000> : vector<8xf32>
    %73 = vector.multi_reduction <maximumf>, %72, %cst_34 [1] : vector<8x8xf32> to vector<8xf32>
    %74 = vector.shape_cast %73 : vector<8xf32> to vector<8x1xf32>
    %75 = vector.broadcast %74 : vector<8x1xf32> to vector<8x8xf32>
    %76 = arith.subf %72, %75 : vector<8x8xf32>
    %77 = math.exp %76 : vector<8x8xf32>
    %cst_35 = arith.constant dense<0.000000e+00> : vector<8xf32>
    %78 = vector.multi_reduction <add>, %77, %cst_35 [1] : vector<8x8xf32> to vector<8xf32>
    %79 = vector.shape_cast %78 : vector<8xf32> to vector<8x1xf32>
    %80 = vector.broadcast %79 : vector<8x1xf32> to vector<8x8xf32>
    %81 = arith.divf %77, %80 : vector<8x8xf32>
    %cst_36 = arith.constant dense<0.000000e+00> : vector<8x8xf32>
    %82 = tpu.matmul %81, %67, %cst_36 {dimension_numbers = #tpu.dot_dimension_numbers<[1], [0], [0], [1], [0, 0, 1, 1], [], []>} : vector<8x8xf32>, vector<8x8xf32>, vector<8x8xf32> -> vector<8x8xf32>
    %c16 = arith.constant 16 : index
    %c0_37 = arith.constant 0 : index
    %83 = vector.load %arg9[%c16, %c0_37] : memref<32x32xf32, #tpu.memory_space<vmem>>, vector<8x32xf32>
    %cst_38 = arith.constant dense<0.000000e+00> : vector<8x32xf32>
    %84 = tpu.matmul %82, %83, %cst_38 {dimension_numbers = #tpu.dot_dimension_numbers<[1], [0], [0], [1], [0, 0, 1, 1], [], []>} : vector<8x8xf32>, vector<8x32xf32>, vector<8x32xf32> -> vector<8x32xf32>
    %85 = arith.addf %64, %84 : vector<8x32xf32>
    %86 = vector.extract_strided_slice %6 {offsets = [0, 24], sizes = [8, 8], strides = [1, 1]} : vector<8x32xf32> to vector<8x8xf32>
    %87 = vector.extract_strided_slice %7 {offsets = [0, 24], sizes = [8, 8], strides = [1, 1]} : vector<8x32xf32> to vector<8x8xf32>
    %88 = vector.extract_strided_slice %8 {offsets = [0, 24], sizes = [8, 8], strides = [1, 1]} : vector<8x32xf32> to vector<8x8xf32>
    %cst_39 = arith.constant dense<0.000000e+00> : vector<8x8xf32>
    %89 = tpu.matmul %86, %87, %cst_39 {dimension_numbers = #tpu.dot_dimension_numbers<[1], [1], [0], [0], [0, 0, 1, 0], [], []>} : vector<8x8xf32>, vector<8x8xf32>, vector<8x8xf32> -> vector<8x8xf32>
    %cst_40 = arith.constant 0.176776692 : f32
    %90 = vector.broadcast %cst_40 : f32 to vector<8x8xf32>
    %91 = arith.mulf %89, %90 : vector<8x8xf32>
    %cst_41 = arith.constant -1.000000e+30 : f32
    %92 = vector.broadcast %cst_41 : f32 to vector<8x8xf32>
    %93 = arith.select %21, %91, %92 : vector<8x8xi1>, vector<8x8xf32>
    %cst_42 = arith.constant dense<0xFF800000> : vector<8xf32>
    %94 = vector.multi_reduction <maximumf>, %93, %cst_42 [1] : vector<8x8xf32> to vector<8xf32>
    %95 = vector.shape_cast %94 : vector<8xf32> to vector<8x1xf32>
    %96 = vector.broadcast %95 : vector<8x1xf32> to vector<8x8xf32>
    %97 = arith.subf %93, %96 : vector<8x8xf32>
    %98 = math.exp %97 : vector<8x8xf32>
    %cst_43 = arith.constant dense<0.000000e+00> : vector<8xf32>
    %99 = vector.multi_reduction <add>, %98, %cst_43 [1] : vector<8x8xf32> to vector<8xf32>
    %100 = vector.shape_cast %99 : vector<8xf32> to vector<8x1xf32>
    %101 = vector.broadcast %100 : vector<8x1xf32> to vector<8x8xf32>
    %102 = arith.divf %98, %101 : vector<8x8xf32>
    %cst_44 = arith.constant dense<0.000000e+00> : vector<8x8xf32>
    %103 = tpu.matmul %102, %88, %cst_44 {dimension_numbers = #tpu.dot_dimension_numbers<[1], [0], [0], [1], [0, 0, 1, 1], [], []>} : vector<8x8xf32>, vector<8x8xf32>, vector<8x8xf32> -> vector<8x8xf32>
    %c24 = arith.constant 24 : index
    %c0_45 = arith.constant 0 : index
    %104 = vector.load %arg9[%c24, %c0_45] : memref<32x32xf32, #tpu.memory_space<vmem>>, vector<8x32xf32>
    %cst_46 = arith.constant dense<0.000000e+00> : vector<8x32xf32>
    %105 = tpu.matmul %103, %104, %cst_46 {dimension_numbers = #tpu.dot_dimension_numbers<[1], [0], [0], [1], [0, 0, 1, 1], [], []>} : vector<8x8xf32>, vector<8x32xf32>, vector<8x32xf32> -> vector<8x32xf32>
    %106 = arith.addf %85, %105 : vector<8x32xf32>
    %c0_47 = arith.constant 0 : index
    %c0_48 = arith.constant 0 : index
    %107 = vector.load %arg10[%c0_47, %c0_48] : memref<1x32xf32, #tpu.memory_space<vmem>>, vector<1x32xf32>
    %108 = vector.broadcast %107 : vector<1x32xf32> to vector<8x32xf32>
    %109 = arith.addf %106, %108 : vector<8x32xf32>
    %110 = arith.addf %109, %1 : vector<8x32xf32>
    %cst_49 = arith.constant dense<0.000000e+00> : vector<8xf32>
    %111 = vector.multi_reduction <add>, %110, %cst_49 [1] : vector<8x32xf32> to vector<8xf32>
    %112 = vector.shape_cast %111 : vector<8xf32> to vector<8x1xf32>
    %113 = arith.mulf %110, %110 : vector<8x32xf32>
    %cst_50 = arith.constant dense<0.000000e+00> : vector<8xf32>
    %114 = vector.multi_reduction <add>, %113, %cst_50 [1] : vector<8x32xf32> to vector<8xf32>
    %115 = vector.shape_cast %114 : vector<8xf32> to vector<8x1xf32>
    %cst_51 = arith.constant 3.200000e+01 : f32
    %116 = vector.broadcast %cst_51 : f32 to vector<8x1xf32>
    %117 = arith.divf %112, %116 : vector<8x1xf32>
    %118 = arith.mulf %112, %117 : vector<8x1xf32>
    %119 = arith.subf %115, %118 : vector<8x1xf32>
    %cst_52 = arith.constant 0.000000e+00 : f32
    %120 = vector.broadcast %cst_52 : f32 to vector<8x1xf32>
    %121 = arith.maximumf %119, %120 : vector<8x1xf32>
    %cst_53 = arith.constant 3.100000e+01 : f32
    %122 = vector.broadcast %cst_53 : f32 to vector<8x1xf32>
    %123 = arith.divf %121, %122 : vector<8x1xf32>
    %124 = math.sqrt %123 : vector<8x1xf32>
    %c0_54 = arith.constant 0 : index
    %c0_55 = arith.constant 0 : index
    %125 = vector.load %arg11[%c0_54, %c0_55] : memref<1x32xf32, #tpu.memory_space<vmem>>, vector<1x32xf32>
    %126 = vector.broadcast %117 : vector<8x1xf32> to vector<8x32xf32>
    %127 = arith.subf %110, %126 : vector<8x32xf32>
    %128 = vector.broadcast %125 : vector<1x32xf32> to vector<8x32xf32>
    %129 = arith.mulf %128, %127 : vector<8x32xf32>
    %cst_56 = arith.constant 1.000000e-03 : f32
    %130 = vector.broadcast %cst_56 : f32 to vector<8x1xf32>
    %131 = arith.addf %124, %130 : vector<8x1xf32>
    %132 = vector.broadcast %131 : vector<8x1xf32> to vector<8x32xf32>
    %133 = arith.divf %129, %132 : vector<8x32xf32>
    %c0_57 = arith.constant 0 : index
    %c0_58 = arith.constant 0 : index
    %134 = vector.load %arg12[%c0_57, %c0_58] : memref<1x32xf32, #tpu.memory_space<vmem>>, vector<1x32xf32>
    %135 = vector.broadcast %134 : vector<1x32xf32> to vector<8x32xf32>
    %136 = arith.addf %133, %135 : vector<8x32xf32>
    %c0_59 = arith.constant 0 : index
    %c0_60 = arith.constant 0 : index
    %c0_61 = arith.constant 0 : index
    %137 = vector.load %arg13[%c0_59, %c0_60, %c0_61] : memref<1x8x32xf32, #tpu.memory_space<vmem>>, vector<1x8x32xf32>
    %138 = vector.shape_cast %137 : vector<1x8x32xf32> to vector<8x32xf32>
    %139 = vector.shape_cast %136 : vector<8x32xf32> to vector<1x8x32xf32>
    tpu.vector_store %arg13[%c0_59, %c0_60, %c0_61], %139 {strides = array<i32>} : memref<1x8x32xf32, #tpu.memory_space<vmem>>, vector<1x8x32xf32>,
    return
  }
  func.func @transform_0(%arg0: i32, %arg1: i32) -> (i32, i32, i32) {
    %c0_i32 = arith.constant 0 : i32
    %c0_i32_0 = arith.constant 0 : i32
    return %arg0, %arg1, %c0_i32 : i32, i32, i32
  }
  func.func @transform_1(%arg0: i32, %arg1: i32) -> (i32, i32, i32) {
    %c0_i32 = arith.constant 0 : i32
    %c0_i32_0 = arith.constant 0 : i32
    %c0_i32_1 = arith.constant 0 : i32
    return %arg0, %c0_i32, %c0_i32_0 : i32, i32, i32
  }
  func.func @transform_2(%arg0: i32, %arg1: i32) -> (i32, i32, i32) {
    %c0_i32 = arith.constant 0 : i32
    %c0_i32_0 = arith.constant 0 : i32
    %c0_i32_1 = arith.constant 0 : i32
    return %arg0, %c0_i32, %c0_i32_0 : i32, i32, i32
  }
  func.func @transform_3(%arg0: i32, %arg1: i32) -> (i32, i32) {
    %c0_i32 = arith.constant 0 : i32
    %c0_i32_0 = arith.constant 0 : i32
    %c0_i32_1 = arith.constant 0 : i32
    return %c0_i32, %c0_i32_0 : i32, i32
  }
  func.func @transform_4(%arg0: i32, %arg1: i32) -> (i32, i32) {
    %c0_i32 = arith.constant 0 : i32
    %c0_i32_0 = arith.constant 0 : i32
    %c0_i32_1 = arith.constant 0 : i32
    return %c0_i32, %c0_i32_0 : i32, i32
  }
  func.func @transform_5(%arg0: i32, %arg1: i32) -> (i32, i32) {
    %c0_i32 = arith.constant 0 : i32
    %c0_i32_0 = arith.constant 0 : i32
    %c0_i32_1 = arith.constant 0 : i32
    return %c0_i32, %c0_i32_0 : i32, i32
  }
  func.func @transform_6(%arg0: i32, %arg1: i32) -> (i32, i32, i32) {
    %c0_i32 = arith.constant 0 : i32
    %c0_i32_0 = arith.constant 0 : i32
    %c0_i32_1 = arith.constant 0 : i32
    return %arg0, %c0_i32, %c0_i32_0 : i32, i32, i32
  }
  func.func @transform_7(%arg0: i32, %arg1: i32) -> (i32, i32) {
    %c0_i32 = arith.constant 0 : i32
    %c0_i32_0 = arith.constant 0 : i32
    %c0_i32_1 = arith.constant 0 : i32
    return %c0_i32, %c0_i32_0 : i32, i32
  }
  func.func @transform_8(%arg0: i32, %arg1: i32) -> (i32, i32) {
    %c0_i32 = arith.constant 0 : i32
    %c0_i32_0 = arith.constant 0 : i32
    %c0_i32_1 = arith.constant 0 : i32
    return %c0_i32, %c0_i32_0 : i32, i32
  }
  func.func @transform_9(%arg0: i32, %arg1: i32) -> (i32, i32) {
    %c0_i32 = arith.constant 0 : i32
    %c0_i32_0 = arith.constant 0 : i32
    %c0_i32_1 = arith.constant 0 : i32
    return %c0_i32, %c0_i32_0 : i32, i32
  }
  func.func @transform_10(%arg0: i32, %arg1: i32) -> (i32, i32) {
    %c0_i32 = arith.constant 0 : i32
    %c0_i32_0 = arith.constant 0 : i32
    %c0_i32_1 = arith.constant 0 : i32
    return %c0_i32, %c0_i32_0 : i32, i32
  }
  func.func @transform_11(%arg0: i32, %arg1: i32) -> (i32, i32, i32) {
    %c0_i32 = arith.constant 0 : i32
    %c0_i32_0 = arith.constant 0 : i32
    return %arg0, %arg1, %c0_i32 : i32, i32, i32
  }
}

</mosaic_0001>

<bundles_post_ra>
// kernel: tpu_custom_call.1
= control target key start
LH: loop header
LB: loop body
LE: loop exit
PB: predicated region body
PF: predicated region fallthrough
CT: control target
= control target key end

     0   :  { %s3252_s0 = inlined_call_operand.hbm [shape: f32[2,8,32], index: 0, kind: input, shape index: {}]   ;;  %s3253_s1 = inlined_call_operand.hbm [shape: f32[2,8,32], index: 1, kind: input, shape index: {}]   ;;  %s3254_s2 = inlined_call_operand.hbm [shape: f32[2,8,32], index: 2, kind: input, shape index: {}]   ;;  %s3255_s3 = inlined_call_operand.hbm [shape: f32[32,32], index: 3, kind: input, shape index: {}]   ;;  %s3256_s4 = inlined_call_operand.hbm [shape: f32[32,32], index: 4, kind: input, shape index: {}]   ;;  %s3257_s5 = inlined_call_operand.hbm [shape: f32[32,32], index: 5, kind: input, shape index: {}]   ;;  %s3258_s6 = inlined_call_operand.vmem [shape: f32[2,1,8], index: 6, kind: input, shape index: {}]   ;;  %s3259_s7 = inlined_call_operand.hbm [shape: f32[32,32], index: 7, kind: input, shape index: {}]   ;;  %s3260_s8 = inlined_call_operand.vmem [shape: f32[1,32], index: 8, kind: input, shape index: {}]   ;;  %s3261_s9 = inlined_call_operand.vmem [shape: f32[1,32], index: 9, kind: input, shape index: {}]   ;;  %s3262_s10 = inlined_call_operand.vmem [shape: f32[1,32], index: 10, kind: input, shape index: {}]   ;;  %s3263_s11 = inlined_call_operand.hbm [shape: f32[2,8,32], index: 11, kind: output, shape index: {}]  }
   0x1   :  { %3290 = sst [smem:[#allocation29_spill]] %s3253_s1 }
   0x2   :  { %3291 = sst [smem:[#allocation30_spill]] %s3255_s3 }
   0x3   :  { %3292 = sst [smem:[#allocation31_spill]] %s3257_s5 }
   0x4   :  { %3293 = sst [smem:[#allocation32_spill]] %s3260_s8 }
   0x5   :  { %3294 = sst [smem:[#allocation33_spill]] %s3261_s9 }
   0x6   :  { %3295 = sst [smem:[#allocation34_spill]] %s3262_s10 }
   0x7   :  { %3296 = sst [smem:[#allocation35_spill]] %s3263_s11 }
   0x8   :  { %16 = vsyncpa [#allocation5], 0 }
   0x9   :  { %18 = vsyncpa [#allocation5 + $0x1], 0 }
   0xa   :  { %19 = vsyncpa [#allocation8], 0 }
   0xb   :  { %21 = vsyncpa [#allocation8 + $0x1], 0 }
   0xc   :  { %22 = vsyncpa [#allocation11], 0 }
   0xd   :  { %23 = vsyncpa [#allocation14], 0 }
   0xe   :  { %24 = vsyncpa [#allocation6], 0 }
   0xf   :  { %26 = vsyncpa [#allocation6 + $0x1], 0  ;;  %s2738_s17 = smov 0   ;;  %s2740_s18 = smov 0  }
  0x10   :  { %s2742_s19 = smov 0   ;;  %s2744_s20 = smov 0  }
  0x11   :  { %s2746_s21 = smov 0   ;;  %s2748_s22 = smov 0  }
  0x12 LB: > { %3297 = sst [smem:[#allocation22_spill]] %s2639_s17  ;;  %s2769_s23 = sadd.s32 4294967295, %s2659_s22   ;;  %s2659_s22 = sphi %s2748_s22, %s32_s22   ;;  %s2655_s21 = sphi %s2746_s21, %s3345_s21   ;;  %s2651_s20 = sphi %s2744_s20, %s3344_s20   ;;  %s2647_s19 = sphi %s2742_s19, %s3348_s19   ;;  %s2643_s18 = sphi %s2740_s18, %s3347_s18   ;;  %s2639_s17 = sphi %s2738_s17, %s3346_s17  }
  0x13   : > { %3298 = sst [smem:[#allocation23_spill]] %s2655_s21  ;;  %p2024_p0 = scmp.ge.s32.totalorder %s2659_s22, 1 }
  0x14   : > { %3299 = sst [smem:[#allocation24_spill]] %s2659_s22  ;;  %p3274_p1 = scmp.eq.s32.totalorder %s2769_s23, 0 }
  0x15   : > { %p330_p2 = scmp.lt.s32.totalorder %s2659_s22, 3  ;;  %s2661_s25 = smov [#allocation10]  }
  0x16   : > { %s342_s26 = sshll.u32 %s2661_s25, 4  ;;  %s2662_s28 = smov [#allocation13]   ;;  %s2778_s26 = int_to_ptr.vmem [resolvable:$true] %s342_s26 }
  0x17   : > { %p2774_p3 = pnand %p2024_p0, %p330_p2  ;;  %s368_s29 = sshll.u32 %s2662_s28, 4  ;;  %s2789_s29 = int_to_ptr.vmem [resolvable:$true] %s368_s29 }
  0x18   : > { %s3302_s3 = sld [smem:[#allocation30_spill]] }
  0x19   : > { %s3300_s24 = scalar_select %p2774_p3, 1, 0 }
  0x1a   : > { %p2245_p4 = pneg %p2774_p3 }
  0x1c   : > { %p2785_p6 = pnand %p2245_p4, %p3274_p1 }
  0x1e   : > { %s3301_s27 = scalar_select %p2785_p6, 1, 0 }
  0x1f   : > { %s2363_s13 = scalar_lea.hbm %s3302_s3, 512  ;;  %p2799_p8 = pneg %p2785_p6 }
  0x20   : > { %p2364_p7 = scmp.ne.s32.totalorder %s3302_s3, %s2363_s13  ;;  %p2370_p11 = scmp.lt.u32.totalorder %s2363_s13, %s3302_s3 }
  0x21   : > { %s3303_s16 = scalar_select %p2799_p8, 1, 0 }
  0x22   : > { %p2366_p9 = pnand %p2799_p8, %p2364_p7 }
  0x24   : > { %p2367_p10 = pneg %p2366_p9 }
  0x26   : > { %p2372_p12 = pnand %p2370_p11, %p2367_p10 }
  0x28   : > { %2375 = shalt.err (!%p2372_p12)
}
  0x29   : > { %s2376_s30 = scalar_lea.vmem %s2778_s26, 512  ;;  %p2384_p4 = scmp.lt.s32.totalorder %s2778_s26, %s2778_s26 }
  0x2a   : > { %p2377_p13 = scmp.ne.s32.totalorder %s2778_s26, %s2376_s30  ;;  %p2385_p5 = scmp.lt.s32.totalorder %s2376_s30, %s2376_s30 }
  0x2c   : > { %p2379_p0 = pnand %p2377_p13, %p2799_p8  ;;  %p2386_p7 = por %p2385_p5, %p2384_p4 }
  0x2e   : > { %p2380_p2 = pneg %p2379_p0 }
  0x30   : > { %p2387_p9 = pnand %p2386_p7, %p2380_p2 }
  0x32   : > { %2390 = shalt.err (!%p2387_p9)
}
  0x33   : > { %s3265_s12 = smov 128   ;;  %s3267_s13 = smov 8  }
  0x34   : > { %2248 = dma.hbm_to_vmem [thread:$0]  (!%p2785_p6), %s3302_s3, 512, %s2778_s26, [#allocation11], %s3265_s12, %s3265_s12, %s3267_s13  }
  0x35   : > { %s3304_s5 = sld [smem:[#allocation31_spill]] }
  0x3b   : > { %s2391_s30 = scalar_lea.hbm %s3304_s5, 512 }
  0x3c   : > { %p2392_p5 = scmp.ne.s32.totalorder %s3304_s5, %s2391_s30  ;;  %p2398_p12 = scmp.lt.u32.totalorder %s2391_s30, %s3304_s5 }
  0x3e   : > { %p2394_p10 = pnand %p2392_p5, %p2799_p8 }
  0x40   : > { %p2395_p11 = pneg %p2394_p10 }
  0x42   : > { %p2400_p13 = pnand %p2398_p12, %p2395_p11 }
  0x44   : > { %2403 = shalt.err (!%p2400_p13)
}
  0x45   : > { %s2404_s26 = scalar_lea.vmem %s2789_s29, 512  ;;  %p2412_p7 = scmp.lt.s32.totalorder %s2789_s29, %s2789_s29 }
  0x46   : > { %p2405_p0 = scmp.ne.s32.totalorder %s2789_s29, %s2404_s26  ;;  %p2413_p9 = scmp.lt.s32.totalorder %s2404_s26, %s2404_s26 }
  0x48   : > { %p2407_p2 = pnand %p2405_p0, %p2799_p8  ;;  %p2414_p5 = por %p2413_p9, %p2412_p7 }
  0x4a   : > { %p2408_p4 = pneg %p2407_p2 }
  0x4c   : > { %p2415_p10 = pnand %p2414_p5, %p2408_p4 }
  0x4e   : > { %2418 = shalt.err (!%p2415_p10)
}
  0x4f   : > { %2254 = dma.hbm_to_vmem [thread:$0]  (!%p2785_p6), %s3304_s5, 512, %s2789_s29, [#allocation14], %s3265_s12, %s3265_s12, %s3267_s13  }
  0x50   : > { %s2023_s10 = sadd.s32 4294967294, %s2659_s22   ;;  %s44_s11 = sadd.s32 1, %s2655_s21 }
  0x51   : > { %p46_p11 = scmp.ge.s32.totalorder %s44_s11, 2  ;;  %s53_s14 = sadd.s32 1, %s2647_s19 }
  0x52   : > { %p60_p12 = scmp.ne.s32.totalorder %s2647_s19, %s2643_s18  ;;  %p61_p13 = scmp.eq.s32.totalorder %s2659_s22, 0 }
  0x53   : > { %s3350_s11 = smov (%p46_p11, %s44_s11), 0  ;;  %p66_p2 = scmp.ne.s32.totalorder %s2643_s18, %s2639_s17 }
  0x54   : > { %3305 = sst [smem:[#allocation25_spill]] %s3350_s11  ;;  %p2857_p0 = por %p61_p13, %p60_p12 }
  0x55   : > { %s48_s29 = ssub.s32 %s2655_s21, %s3350_s11  ;;  %p317_p4 = scmp.eq.s32.totalorder %s2769_s23, 1 }
  0x56   : > { %p51_p7 = scmp.eq.s32.totalorder %s48_s29, 0  ;;  %p2868_p9 = por %p3274_p1, %p66_p2 }
  0x57   : > { %p2872_p5 = por %p317_p4, %p60_p12  ;;  %p323_p10 = scmp.eq.s32.totalorder %s2023_s10, 1 }
  0x58   : > { %s3307_s25 = scalar_select %p2868_p9, 1, 0 }
  0x59   : > { %s3308_s28 = scalar_select %p2872_p5, 1, 0 }
  0x5a   : > { %s2877_s30 = scalar_select %p51_p7, %s2647_s19, %s53_s14  }
  0x5b   : > { %3309 = sst [smem:[#allocation26_spill]] %s3308_s28  ;;  %p2879_p11 = por %p323_p10, %p66_p2 }
  0x5c   : > { %3310 = sst [smem:[#allocation27_spill]] %s2877_s30  ;;  %p2276_p13 = scmp.lt.s32.totalorder %s2659_s22, 2 }
  0x5d   : > { %s3311_s26 = scalar_select %p2879_p11, 1, 0 }
  0x5e   : > { %s3269_s8 = sand.u32 1, %s2647_s19   ;;  %s2886_s9 = sshll.u32 %s2655_s21, 7 }
  0x5f   : > { %3312 = sst [smem:[#allocation28_spill]] %s3311_s26  ;;  %s2890_s29 = sshll.u32 %s3269_s8, 3 }
  0x60   : > { %p2894_p12 = pnand %p2276_p13, %p2857_p0  ;;  %s423_s10 = sand.u32 1, %s2659_s22  }
  0x61   : > { %s3314_s1 = sld [smem:[#allocation29_spill]]  ;;  %s427_s5 = scalar_lea.vmem [#allocation7], %s2890_s29 }
  0x62   : > { %s3313_s12 = scalar_select %p2894_p12, 1, 0 }
  0x63   : > { %s434_s8 = sshll.u32 %s427_s5, 4  ;;  %s2908_s15 = scalar_lea.sflag [#allocation8], %s423_s10  ;;  %s2906_s8 = int_to_ptr.vmem [resolvable:$true] %s434_s8 }
  0x64   : > { %p2914_p2 = pneg %p2894_p12 }
  0x66   : > { %s3315_s21 = scalar_select %p2914_p2, 1, 0 }
  0x67   : > { %s2903_s3 = scalar_lea.hbm %s3314_s1, %s2886_s9  ;;  %s2424_s30 = scalar_lea.hbm %s3314_s1, 256 }
  0x68   : > { %s2419_s11 = scalar_lea.hbm %s2903_s3, 128  ;;  %p2425_p10 = scmp.lt.u32.totalorder %s2903_s3, %s3314_s1 }
  0x69   : > { %p2420_p0 = scmp.ne.s32.totalorder %s2903_s3, %s2419_s11  ;;  %p2426_p13 = scmp.lt.u32.totalorder %s2424_s30, %s2419_s11 }
  0x6a   : > { %p2428_p11 = scmp.lt.u32.totalorder %s2419_s11, %s2903_s3 }
  0x6b   : > { %p2422_p4 = pnand %p2914_p2, %p2420_p0  ;;  %p2427_p1 = por %p2426_p13, %p2425_p10 }
  0x6d   : > { %p2423_p7 = pneg %p2422_p4  ;;  %p2429_p5 = por %p2428_p11, %p2427_p1 }
  0x6f   : > { %p2430_p9 = pnand %p2429_p5, %p2423_p7 }
  0x71   : > { %2433 = shalt.err (!%p2430_p9)
}
  0x72   : > { %s2434_s10 = scalar_lea.vmem %s2906_s8, 128  ;;  %s2665_s13 = smov [#allocation7]  }
  0x73   : > { %p2435_p0 = scmp.ne.s32.totalorder %s2906_s8, %s2434_s10  ;;  %s2439_s14 = sshll.u32 %s2665_s13, 4  ;;  %s2440_s14 = int_to_ptr.vmem [resolvable:$false] %s2439_s14 }
  0x74   : > { %s2441_s22 = scalar_lea.vmem %s2440_s14, 256  ;;  %p2442_p6 = scmp.lt.s32.totalorder %s2906_s8, %s2440_s14 }
  0x75   : > { %p2437_p4 = pnand %p2435_p0, %p2914_p2  ;;  %p2443_p8 = scmp.lt.s32.totalorder %s2441_s22, %s2434_s10 }
  0x77   : > { %p2438_p3 = pneg %p2437_p4  ;;  %p2444_p10 = por %p2443_p8, %p2442_p6 }
  0x79   : > { %p2445_p13 = pnand %p2444_p10, %p2438_p3 }
  0x7b   : > { %2448 = shalt.err (!%p2445_p13)
}
  0x7c   : > { %2264 = dma.hbm_to_vmem [thread:$0]  (!%p2894_p12), %s2903_s3, 128, %s2906_s8, %s2908_s15  }
  0x7d   : > { %s2666_s11 = smov [#allocation12]   ;;  %s2667_s5 = smov [#allocation15]  }
  0x7e   : > { %s355_s30 = sshll.u32 %s2666_s11, 4  ;;  %s381_s1 = sshll.u32 %s2667_s5, 4  ;;  %s356_s30 = int_to_ptr.vmem [resolvable:$true] %s355_s30  ;;  %s382_s1 = int_to_ptr.vmem [resolvable:$true] %s381_s1 }
  0x7f   : > { %s2449_s14 = scalar_lea.hbm %s3256_s4, 512  ;;  %p3316_p3 = scmp.ne.s32.totalorder %s3303_s16, 0 }
  0x80   : > { %p2450_p1 = scmp.ne.s32.totalorder %s3256_s4, %s2449_s14  ;;  %p2456_p9 = scmp.lt.u32.totalorder %s2449_s14, %s3256_s4 }
  0x82   : > { %p2452_p6 = pnand %p2450_p1, %p3316_p3 }
  0x84   : > { %p2453_p8 = pneg %p2452_p6 }
  0x86   : > { %p2458_p5 = pnand %p2456_p9, %p2453_p8 }
  0x88   : > { %2461 = shalt.err (!%p2458_p5)
}
  0x89   : > { %s2462_s3 = scalar_lea.vmem %s356_s30, 512  ;;  %p2470_p4 = scmp.lt.s32.totalorder %s356_s30, %s356_s30 }
  0x8a   : > { %p2463_p11 = scmp.ne.s32.totalorder %s356_s30, %s2462_s3  ;;  %p2471_p10 = scmp.lt.s32.totalorder %s2462_s3, %s2462_s3 }
  0x8c   : > { %p2465_p7 = pnand %p2463_p11, %p3316_p3  ;;  %p2472_p13 = por %p2471_p10, %p2470_p4 }
  0x8e   : > { %p2466_p0 = pneg %p2465_p7 }
  0x90   : > { %p2473_p12 = pnand %p2472_p13, %p2466_p0 }
  0x92   : > { %2476 = shalt.err (!%p2473_p12)
}
  0x93   : > { %p3317_p1 = scmp.ne.s32.totalorder %s3301_s27, 0  ;;  %s3318_s26 = smov 8  }
  0x94   : > { %s3319_s8 = smov 128   ;;  %s2477_s13 = scalar_lea.hbm %s3259_s7, 512 }
  0x95   : > { %2251 = dma.hbm_to_vmem [thread:$0]  (!%p3317_p1), %s3256_s4, 512, %s356_s30, [#allocation11], %s3319_s8, %s3319_s8, %s3318_s26  }
  0x96   : > { %p2478_p6 = scmp.ne.s32.totalorder %s3259_s7, %s2477_s13  ;;  %p2484_p9 = scmp.lt.u32.totalorder %s2477_s13, %s3259_s7 }
  0x98   : > { %p2480_p12 = pnand %p2478_p6, %p3316_p3 }
  0x9a   : > { %p2481_p8 = pneg %p2480_p12 }
  0x9c   : > { %p2486_p5 = pnand %p2484_p9, %p2481_p8 }
  0x9e   : > { %2489 = shalt.err (!%p2486_p5)
}
  0x9f   : > { %s2490_s17 = scalar_lea.vmem %s382_s1, 512  ;;  %p2498_p4 = scmp.lt.s32.totalorder %s382_s1, %s382_s1 }
  0xa0   : > { %p2491_p11 = scmp.ne.s32.totalorder %s382_s1, %s2490_s17  ;;  %p2499_p10 = scmp.lt.s32.totalorder %s2490_s17, %s2490_s17 }
  0xa2   : > { %p2493_p7 = pnand %p2491_p11, %p3316_p3  ;;  %p2500_p13 = por %p2499_p10, %p2498_p4 }
  0xa4   : > { %p2494_p0 = pneg %p2493_p7 }
  0xa6   : > { %p2501_p2 = pnand %p2500_p13, %p2494_p0 }
  0xa8   : > { %2504 = shalt.err (!%p2501_p2)
}
  0xa9   : > { %2257 = dma.hbm_to_vmem [thread:$0]  (!%p3317_p1), %s3259_s7, 512, %s382_s1, [#allocation14], %s3319_s8, %s3319_s8, %s3318_s26  }
  0xaa   : > { %s2984_s5 = scalar_lea.hbm %s3252_s0, %s2886_s9  ;;  %s408_s27 = scalar_lea.vmem [#allocation4], %s2890_s29 }
  0xab   : > { %s416_s13 = sshll.u32 %s408_s27, 4  ;;  %s2993_s22 = scalar_lea.hbm %s3254_s2, %s2886_s9  ;;  %s2987_s13 = int_to_ptr.vmem [resolvable:$true] %s416_s13 }
  0xac   : > { %s3320_s3 = sand.u32 1, %s2647_s19   ;;  %s2505_s26 = scalar_lea.hbm %s2984_s5, 128 }
  0xad   : > { %s405_s1 = scalar_lea.sflag [#allocation5], %s3320_s3  ;;  %p2506_p2 = scmp.ne.s32.totalorder %s2984_s5, %s2505_s26 }
  0xae   : > { %p3321_p3 = scmp.ne.s32.totalorder %s3315_s21, 0  ;;  %s2510_s30 = scalar_lea.hbm %s3252_s0, 256 }
  0xaf   : > { %p2511_p12 = scmp.lt.u32.totalorder %s2984_s5, %s3252_s0  ;;  %p2512_p8 = scmp.lt.u32.totalorder %s2510_s30, %s2505_s26 }
  0xb0   : > { %p2508_p1 = pnand %p2506_p2, %p3321_p3  ;;  %p2514_p5 = scmp.lt.u32.totalorder %s2505_s26, %s2984_s5 }
  0xb1   : > { %p2513_p9 = por %p2512_p8, %p2511_p12 }
  0xb2   : > { %p2509_p6 = pneg %p2508_p1 }
  0xb3   : > { %p2515_p11 = por %p2514_p5, %p2513_p9 }
  0xb5   : > { %p2516_p7 = pnand %p2515_p11, %p2509_p6 }
  0xb7   : > { %2519 = shalt.err (!%p2516_p7)
}
  0xb8   : > { %s2520_s9 = scalar_lea.vmem %s2987_s13, 128  ;;  %s2668_s11 = smov [#allocation4]  }
  0xb9   : > { %p2521_p0 = scmp.ne.s32.totalorder %s2987_s13, %s2520_s9  ;;  %s2525_s27 = sshll.u32 %s2668_s11, 4  ;;  %s2526_s27 = int_to_ptr.vmem [resolvable:$false] %s2525_s27 }
  0xba   : > { %s2527_s14 = scalar_lea.vmem %s2526_s27, 256  ;;  %p2528_p13 = scmp.lt.s32.totalorder %s2987_s13, %s2526_s27 }
  0xbb   : > { %p2523_p4 = pnand %p2521_p0, %p3321_p3  ;;  %p2529_p2 = scmp.lt.s32.totalorder %s2527_s14, %s2520_s9 }
  0xbd   : > { %p2524_p10 = pneg %p2523_p4  ;;  %p2530_p1 = por %p2529_p2, %p2528_p13 }
  0xbf   : > { %p2531_p12 = pnand %p2530_p1, %p2524_p10 }
  0xc1   : > { %2534 = shalt.err (!%p2531_p12)
}
  0xc2   : > { %p3322_p6 = scmp.ne.s32.totalorder %s3313_s12, 0  ;;  %s445_s10 = scalar_lea.vmem [#allocation9], %s2890_s29 }
  0xc3   : > { %s452_s3 = sshll.u32 %s445_s10, 4  ;;  %s2535_s26 = scalar_lea.hbm %s2993_s22, 128  ;;  %s453_s3 = int_to_ptr.vmem [resolvable:$true] %s452_s3 }
  0xc4   : > { %2261 = dma.hbm_to_vmem [thread:$0]  (!%p3322_p6), %s2984_s5, 128, %s2987_s13, %s405_s1  }
  0xc5   : > { %p2536_p8 = scmp.ne.s32.totalorder %s2993_s22, %s2535_s26  ;;  %s2540_s30 = scalar_lea.hbm %s3254_s2, 256 }
  0xc6   : > { %p2541_p11 = scmp.lt.u32.totalorder %s2993_s22, %s3254_s2  ;;  %p2542_p7 = scmp.lt.u32.totalorder %s2540_s30, %s2535_s26 }
  0xc7   : > { %p2538_p9 = pnand %p2536_p8, %p3321_p3  ;;  %p2544_p4 = scmp.lt.u32.totalorder %s2535_s26, %s2993_s22 }
  0xc8   : > { %p2543_p0 = por %p2542_p7, %p2541_p11 }
  0xc9   : > { %p2539_p5 = pneg %p2538_p9 }
  0xca   : > { %p2545_p10 = por %p2544_p4, %p2543_p0 }
  0xcc   : > { %p2546_p13 = pnand %p2545_p10, %p2539_p5 }
  0xce   : > { %2549 = shalt.err (!%p2546_p13)
}
  0xcf   : > { %s2550_s29 = scalar_lea.vmem %s453_s3, 128  ;;  %s2669_s5 = smov [#allocation9]  }
  0xd0   : > { %p2551_p2 = scmp.ne.s32.totalorder %s453_s3, %s2550_s29  ;;  %s2555_s13 = sshll.u32 %s2669_s5, 4  ;;  %s2556_s13 = int_to_ptr.vmem [resolvable:$false] %s2555_s13 }
  0xd1   : > { %s2557_s1 = scalar_lea.vmem %s2556_s13, 256  ;;  %p2558_p8 = scmp.lt.s32.totalorder %s453_s3, %s2556_s13 }
  0xd2   : > { %p2553_p1 = pnand %p2551_p2, %p3321_p3  ;;  %p2559_p9 = scmp.lt.s32.totalorder %s2557_s1, %s2550_s29 }
  0xd4   : > { %p2554_p12 = pneg %p2553_p1  ;;  %p2560_p6 = por %p2559_p9, %p2558_p8 }
  0xd6   : > { %p2561_p7 = pnand %p2560_p6, %p2554_p12 }
  0xd8   : > { %2564 = shalt.err (!%p2561_p7)
}
  0xd9   : > { %p3323_p11 = scmp.ne.s32.totalorder %s3313_s12, 0  ;;  %p3324_p5 = scmp.ne.s32.totalorder %s3300_s24, 0 }
  0xda   : > { %s3040_s21 = sand.u32 (!%p3324_p5), 1, %s2643_s18   ;;  %p3325_p3 = scmp.ne.s32.totalorder (!%p3324_p5), %s3307_s25, 0 }
  0xdb   : > { %2267 = dma.hbm_to_vmem [thread:$0]  (!%p3323_p11), %s2993_s22, 128, %s453_s3, %s2908_s15  }
  0xdc   : > { %467 = sbr.rel (%p3324_p5) target bundleno = 3024 (0xbd0), region = 64  ;;  %s3043_s9 = sshll.u32 (!%p3324_p5), %s3040_s21, 3 }
  0xdd   : > { %s470_s11 = scalar_lea.sflag (!%p3324_p5), [#allocation5], %s3040_s21  ;;  %s473_s27 = scalar_lea.vmem (!%p3324_p5), [#allocation4], %s3043_s9 }
  0xe3   : > { %2618 = dma.done.wait (%p3325_p3), %s470_s11, 128  }
  0xe4   : > { %2620 = vsyncadd (%p3325_p3), %s470_s11, 4294967168  ;;  %s478_s24 = sand.u32 1, %s2769_s23   ;;  %s482_s15 = scalar_lea.vmem [#allocation7], %s3043_s9 }
  0xe5   : > { %s479_s12 = scalar_lea.sflag [#allocation8], %s478_s24 }
  0xe6   : > { %2622 = dma.done.wait (%p3325_p3), %s479_s12, 256  }
  0xe7   : > { %2624 = vsyncadd (%p3325_p3), %s479_s12, 4294967040  ;;  %s491_s22 = scalar_lea.vmem [#allocation9], %s3043_s9  ;;  %p3326_p6 = scmp.eq.s32.totalorder %s2769_s23, 0 }
  0xe9   : > { %2626 = dma.done.wait (%p3326_p6), [#allocation11], 1024   ;;  %p3327_p0 = pmov %p3326_p6 }
  0xeb   : > { %2628 = vsyncadd (%p3327_p0), [#allocation11], 4294966272  ;;  %p3328_p4 = pmov %p3327_p0 }
  0xec   : > { %p3329_p10 = pmov %p3327_p0 }
  0xed   : > { %2630 = dma.done.wait (%p3328_p4), [#allocation14], 1024  }
  0xee   : > { %2632 = vsyncadd (%p3329_p10), [#allocation14], 4294966272  ;;  %v2670_v0 = vmov 0.0|0.0   ;;  %vm2671_vm0 = vmmov 0   ;;  %v2672_v1 = vmov 0.0   ;;  %v568_v2 = vld [vmem:[#allocation12] sm:$0xff]  ;;  %v809_v32 = vlaneseq }
  0xef   : > { %2203 = vmatprep.subr.bf16.mxu0 %v2670_v0  ;;  %2118 = vmatprep.mubr.msk.f32.mxu0 %vm2671_vm0, %v2672_v1  ;;  %v569_v3 = vld [vmem:[#allocation12 + $0x8] sm:$0xff]  ;;  %v570_v4 = vld [vmem:[#allocation12 + $0x10] sm:$0xff]  ;;  %v571_v6 = vld [vmem:[#allocation12 + $0x18] sm:$0xff]  ;;  %vm572_vm1 = vcmask 261120   ;;  %vm823_vm2 = vcmask 64512   ;;  %s2673_s23 = smov 120  }
  0xf0   : > { %2209 = vmatprep.subr.bf16.mxu1 %v2670_v0  ;;  %2129 = vmatprep.mubr.msk.f32.mxu1 %vm2671_vm0, %v2672_v1  ;;  %v2204_v5 = vpack.c.bf16 %v569_v3, %v568_v2  ;;  %v2207_v7 = vpack.c.bf16 %v571_v6, %v570_v4  ;;  %v648_v8 = vld [vmem:[#allocation13] sm:$0xff]  ;;  %v649_v9 = vld [vmem:[#allocation13 + $0x8] sm:$0xff]  ;;  %v728_v15 = vld [vmem:[#allocation10 + $0x10] sm:$0xff]  ;;  %p559_p13 = scmp.lt.s32.totalorder %s2651_s20, 1  ;;  %v810_v34 = vshrl.u32 %v809_v32, 7  ;;  %v2674_v37 = vmov 0  }
  0xf1   : > { %v726_v10 = vld [vmem:[#allocation10] sm:$0xff]  ;;  %v727_v11 = vld [vmem:[#allocation10 + $0x8] sm:$0xff]  ;;  %v2210_v12 = vpack.c.bf16 %v649_v9, %v648_v8  ;;  %v729_v16 = vld [vmem:[#allocation10 + $0x18] sm:$0xff]  ;;  %v820_v40 = vand.u32 127, %v809_v32  ;;  %s2675_s26 = smov 112   ;;  %s2676_s8 = smov 104  }
  0xf2   : > { %2205 = vmatpush3.bf16.msra.mxu0 %v2204_v5  ;;  %v567_v13 = vld [vmem:[%s482_s15] sm:$0xff]  ;;  %v2216_v14 = vpack.c.bf16 %v727_v11, %v726_v10  ;;  %v2219_v17 = vpack.c.bf16 %v729_v16, %v728_v15  ;;  %v3075_v18 = vld [vmem:[%s473_s27] sm:$0xff]  ;;  %s560_s25 = scalar_select %p559_p13, %s2651_s20, 1  ;;  %v811_v36 = vsub.s32 0, %v810_v34 }
  0xf3   : > { %2206 = vmatprep.subr.bf16.mxu0 %v2670_v0  ;;  %2211 = vmatpush3.bf16.msra.mxu1 %v2210_v12  ;;  %v650_v19 = vld [vmem:[#allocation13 + $0x10] sm:$0xff]  ;;  %v651_v20 = vld [vmem:[#allocation13 + $0x18] sm:$0xff]  ;;  %vm821_vm5 = vcmp.le.s32.totalorder %v820_v40, %v810_v34  ;;  %v1155_v2 = vld [vmem:[#allocation15 + $0x8] sm:$0xff]  ;;  %s3332_s28 = sld [smem:[#allocation32_spill]]  ;;  %s3333_s5 = sld [smem:[#allocation33_spill]] }
  0xf4   : > { %2212 = vmatprep.subr.bf16.mxu1 %v2670_v0  ;;  %v2213_v21 = vpack.c.bf16 %v651_v20, %v650_v19  ;;  %v647_v22 = vld [vmem:[%s491_s22] sm:$0xff]  ;;  %s561_s3 = scalar_lea.vmem %s3258_s6, %s560_s25  ;;  %s3334_s13 = sld [smem:[#allocation26_spill]] }
  0xf5   : > { %v806_v33 = vld [vmem:[%s561_s3] sm:$0x1]  ;;  %s3335_s27 = sld [smem:[#allocation34_spill]]  ;;  %s2068_s24 = sshll.u32 %s2651_s20, 7 }
  0xf6   : > { %2208 = vmatpush3.bf16.msra.mxu0 %v2207_v7  ;;  %vm807_vm3 = vcmp.gt.f32.partialorder %v806_v33, 0.0  ;;  %v986_v7 = vld [vmem:[#allocation15] sm:$0xff]  ;;  %s558_s12 = scalar_lea.vmem [#allocation16], %s3043_s9  ;;  %s3336_s25 = sld [smem:[#allocation35_spill]] }
  0xf7   : > { %2215 = vmatprep.subr.bf16.mxu0 %v2670_v0  ;;  %2214 = vmatpush3.bf16.msra.mxu1 %v2213_v21  ;;  %v808_v38 = vsel %vm807_vm3, 1, %v2674_v37  ;;  %s1852_s15 = sshll.u32 %s558_s12, 4  ;;  %s1838_s10 = scalar_lea.sflag [#allocation6], %s3040_s21  ;;  %s3204_s15 = int_to_ptr.vmem [resolvable:$true] %s1852_s15 }
  0xf8   : > { %2143 = vmatprep.subr.mxu1 %v2672_v1  ;;  %v812_v39 = vrot.slane %v808_v38, %v811_v36  ;;  %s2565_s3 = scalar_lea.vmem %s3204_s15, 128  ;;  %s2677_s20 = smov [#allocation16]  }
  0xf9   : > { %2119 = vmatmul.mubr.msk.f32.vlgmr.msra.gmra.mrb[0].mxu0 %vm572_vm1, %v567_v13  ;;  %p2566_p2 = scmp.ne.s32.totalorder %s3204_s15, %s2565_s3  ;;  %s2569_s9 = sshll.u32 %s2677_s20, 4  ;;  %s2570_s9 = int_to_ptr.vmem [resolvable:$false] %s2569_s9 }
  0xfa   : > { %2217 = vmatpush3.bf16.msra.mxu0 %v2216_v14  ;;  %2140 = vmatprep.mubr.msk.f32.mxu0 %vm2671_vm0, %v2672_v1  ;;  %vm813_vm4 = vcmp.eq.s32.totalorder %v812_v39, 1  ;;  %p3337_p1 = scmp.ne.s32.totalorder %s3334_s13, 0  ;;  %p2572_p9 = scmp.lt.s32.totalorder %s3204_s15, %s2570_s9 }
  0xfb   : > { %2218 = vmatprep.subr.bf16.mxu0 %v2670_v0  ;;  %2130 = vmatmul.mubr.msk.f32.vlgmr.msra.gmra.mrb[0].mxu1 %vm572_vm1, %v647_v22  ;;  %vm3119_vm6 = vmand %vm813_vm4, %vm821_vm5 }
  0xfc   : > { %2145 = vmatprep.mubr.msk.f32.mxu1 %vm2671_vm0, %v2672_v1  ;;  %s3202_s14 = scalar_lea.hbm %s3336_s25, %s2068_s24  ;;  %p2567_p12 = pnand %p2566_p2, %p3337_p1 }
  0xfe   : > { %2220 = vmatpush3.bf16.msra.mxu0 %v2219_v17  ;;  %p2568_p8 = pneg %p2567_p12 }
  0xff   : > { %2153 = vmatprep.subr.mxu0 %v2672_v1 }
 0x101   : > { %2141 = vmatmul.mubr.msk.f32.vlgmr.msra.gmra.mrb[2].mxu0 %vm572_vm1, %v3075_v18 }
 0x102   : > { %2155 = vmatprep.mubr.msk.f32.mxu0 %vm2671_vm0, %v2672_v1 }
 0x1cc   : > { %v642_v23 = vpop.f32.mrb[0].mxu0 }
 0x1cd   : > { %646 = vst.msk [vmem:[#allocation2] sm:$0xff] %vm572_vm1, %v642_v23  ;;  %v2120_v24 = vpop.f32.mrb[1].mxu0 }
 0x1ce   : > { %v721_v28 = vpop.f32.mrb[0].mxu1 }
 0x1cf   : > { %725 = vst.msk [vmem:[#allocation3] sm:$0xff] %vm572_vm1, %v721_v28  ;;  %v2131_v29 = vpop.f32.mrb[1].mxu1 }
 0x1d4   : > { %v3089_v25 = vld [vmem:[#allocation2] sm:$0xff]  ;;  %v3091_v26 = vpop.f32.mrb[2].mxu0 }
 0x1d5   : > { %989 = vrot.lane.b32.xlu0 %v3089_v25, %s2673_s23  ;;  %2144 = vmatpush3.xpose.msk.msra.mxu1 %vm823_vm2, %v3089_v25  ;;  %v2142_v27 = vpop.f32.mrb[3].mxu0 }
 0x1d6   : > { %2148 = vmatprep.subr.mxu1 %v2672_v1  ;;  %v3115_v35 = vld [vmem:[#allocation3] sm:$0xff] }
 0x1d8   : > { %2146 = vmatmul.mubr.msk.f32.vlgmr.msra.gmra.mrb[2].mxu1 %vm823_vm2, %v3091_v26 }
 0x1d9   : > { %987 = vrot.lane.b32.xlu0 %v3091_v26, %s2673_s23  ;;  %2150 = vmatprep.mubr.msk.f32.mxu1 %vm2671_vm0, %v2672_v1 }
 0x1da   : > { %2149 = vmatpush3.msra.mxu1 %v3115_v35 }
 0x1db   : > { %2158 = vmatprep.subr.mxu1 %v2672_v1 }
 0x247   : > { %v990_v30 = vpop.permute.xlu0 %989 }
 0x248   : > { %2154 = vmatpush3.xpose.msk.msra.mxu0 %vm823_vm2, %v990_v30 }
 0x249   : > { %2163 = vmatprep.subr.mxu0 %v2672_v1 }
 0x24b   : > { %v988_v31 = vpop.permute.xlu0 %987 }
 0x24c   : > { %2156 = vmatmul.mubr.msk.f32.vlgmr.msra.gmra.mrb[4].mxu0 %vm823_vm2, %v988_v31 }
 0x24d   : > { %2165 = vmatprep.mubr.msk.f32.mxu0 %vm2671_vm0, %v2672_v1  ;;  %2164 = vmatpush3.msra.mxu0 %v1155_v2 }
 0x24e   : > { %2173 = vmatprep.subr.mxu0 %v2672_v1 }
 0x2ab   : > { %v896_v41 = vpop.f32.mrb[2].mxu1 }
 0x2ac   : > { %v900_v43 = vmul.f32 0.17677669, %v896_v41  ;;  %v2147_v44 = vpop.f32.mrb[3].mxu1 }
 0x2ae   : > { %v901_v45 = vsel %vm3119_vm6, %v900_v43, -1e+30 }
 0x2af   : > { %v902_v46 = vsel %vm823_vm2, %v901_v45, -inf }
 0x2b0   : > { %903 = vmax.xlane.f32.xlu1 %v902_v46 }
 0x31f   : > { %v1061_v47 = vpop.f32.mrb[4].mxu0 }
 0x320   : > { %v1065_v48 = vmul.f32 0.17677669, %v1061_v47  ;;  %v2157_v49 = vpop.f32.mrb[5].mxu0 }
 0x322   : > { %v1066_v50 = vsel %vm3119_vm6, %v1065_v48, -1e+30 }
 0x323   : > { %v1067_v51 = vsel %vm823_vm2, %v1066_v50, -inf }
 0x324   : > { %1068 = vmax.xlane.f32.xlu1 %v1067_v51 }
 0x33d   : > { %v904_v52 = vpop.xlane.xlu1 %903 }
 0x33e   : > { %v905_v53 = vsub.f32 %v901_v45, %v904_v52 }
 0x340   : > { %v906_v54 = vmul.f32 1.442695, %v905_v53 }
 0x342   : > { %2343 = vpow2.f32 %v906_v54 }
 0x34c   : > { %v2344_v55 = vpop.eup %2343 }
 0x34d   : > { %v908_v56 = vsel %vm823_vm2, %v2344_v55, 0.0 }
 0x34e   : > { %909 = vadd.xlane.f32.xlu0 %v908_v56 }
 0x364   : > { %1393 = vrot.lane.b32.xlu0 %v3115_v35, %s2675_s26 }
 0x368   : > { %1546 = vrot.lane.b32.xlu0 %v3089_v25, %s2676_s8 }
 0x3b1   : > { %v1069_v57 = vpop.xlane.xlu1 %1068 }
 0x3b2   : > { %v1070_v58 = vsub.f32 %v1066_v50, %v1069_v57 }
 0x3b4   : > { %v1071_v59 = vmul.f32 1.442695, %v1070_v58 }
 0x3b6   : > { %2345 = vpow2.f32 %v1071_v59 }
 0x3c0   : > { %v2346_v60 = vpop.eup %2345 }
 0x3c1   : > { %v1073_v61 = vsel %vm823_vm2, %v2346_v60, 0.0 }
 0x3c2   : > { %1074 = vadd.xlane.f32.xlu1 %v1073_v61 }
 0x3d3   : > { %1079 = vrot.lane.b32.xlu1 %v3115_v35, %s2673_s23 }
 0x3d7   : > { %1304 = vrot.lane.b32.xlu1 %v3089_v25, %s2675_s26 }
 0x3db   : > { %v910_v62 = vpop.xlane.xlu0 %909  ;;  %1302 = vrot.lane.b32.xlu1 %v3091_v26, %s2675_s26  ;;  %s2571_s26 = scalar_lea.vmem %s2570_s9, 256 }
 0x3dc   : > { %2347 = vrcp.f32 %v910_v62  ;;  %p2573_p7 = scmp.lt.s32.totalorder %s2571_s26, %s2565_s3 }
 0x3de   : > { %p2574_p11 = por %p2573_p7, %p2572_p9 }
 0x3df   : > { %v1394_v9 = vpop.permute.xlu0 %1393 }
 0x3e0   : > { %p2575_p5 = pnand %p2574_p11, %p2568_p8 }
 0x3e3   : > { %v1547_v32 = vpop.permute.xlu0 %1546 }
 0x3e6   : > { %v2348_v63 = vpop.eup %2347 }
 0x3e7   : > { %v912_v0 = vmul.f32 %v2348_v63, %v2344_v55 }
 0x3e9   : > { %2151 = vmatmul.mubr.msk.f32.vlgmr.msra.gmra.mrb[4].mxu1 %vm823_vm2, %v912_v0 }
 0x3ea   : > { %2160 = vmatprep.mubr.msk.f32.mxu1 %vm2671_vm0, %v2672_v1 }
 0x44f   : > { %v1075_v3 = vpop.xlane.xlu1 %1074 }
 0x450   : > { %2349 = vrcp.f32 %v1075_v3 }
 0x453   : > { %v1080_v4 = vpop.permute.xlu1 %1079 }
 0x454   : > { %2159 = vmatpush3.msra.mxu1 %v1080_v4 }
 0x455   : > { %2168 = vmatprep.subr.mxu1 %v2672_v1 }
 0x457   : > { %v1305_v11 = vpop.permute.xlu1 %1304 }
 0x45a   : > { %v2350_v5 = vpop.eup %2349 }
 0x45b   : > { %v1077_v6 = vmul.f32 %v2350_v5, %v2346_v60  ;;  %v1303_v14 = vpop.permute.xlu1 %1302 }
 0x45d   : > { %2161 = vmatmul.mubr.msk.f32.vlgmr.msra.gmra.mrb[6].mxu1 %vm823_vm2, %v1077_v6 }
 0x45e   : > { %2169 = vmatpush3.msra.mxu1 %v986_v7  ;;  %2170 = vmatprep.mubr.msk.f32.mxu1 %vm2671_vm0, %v2672_v1 }
 0x45f   : > { %2178 = vmatprep.subr.mxu1 %v2672_v1 }
 0x4bc   : > { %v982_v8 = vpop.f32.mrb[4].mxu1 }
 0x4bd   : > { %v2152_v10 = vpop.f32.mrb[5].mxu1  ;;  %2171 = vmatmul.mubr.msk.f32.vlgmr.msra.gmra.mrb[8].mxu1 %vm823_vm2, %v982_v8 }
 0x4be   : > { %2179 = vmatpush3.msra.mxu1 %v1394_v9  ;;  %2180 = vmatprep.mubr.msk.f32.mxu1 %vm2671_vm0, %v2672_v1 }
 0x4bf   : > { %2188 = vmatprep.subr.mxu1 %v2672_v1 }
 0x530   : > { %v1151_v12 = vpop.f32.mrb[6].mxu1 }
 0x531   : > { %v2162_v13 = vpop.f32.mrb[7].mxu1  ;;  %2166 = vmatmul.mubr.msk.f32.vlgmr.msra.gmra.mrb[6].mxu0 %vm823_vm2, %v1151_v12 }
 0x532   : > { %2174 = vmatpush3.xpose.msk.msra.mxu0 %vm823_vm2, %v1305_v11  ;;  %2175 = vmatprep.mubr.msk.f32.mxu0 %vm2671_vm0, %v2672_v1 }
 0x533   : > { %2183 = vmatprep.subr.mxu0 %v2672_v1 }
 0x535   : > { %2176 = vmatmul.mubr.msk.f32.vlgmr.msra.gmra.mrb[8].mxu0 %vm823_vm2, %v1303_v14 }
 0x536   : > { %2185 = vmatprep.mubr.msk.f32.mxu0 %vm2671_vm0, %v2672_v1 }
 0x590   : > { %v1298_v15 = vpop.f32.mrb[8].mxu1 }
 0x591   : > { %v2172_v16 = vpop.f32.mrb[9].mxu1 }
 0x604   : > { %v1225_v17 = vpop.f32.mrb[6].mxu0 }
 0x605   : > { %v1299_v19 = vadd.f32 %v1298_v15, %v1225_v17  ;;  %v2167_v20 = vpop.f32.mrb[7].mxu0  ;;  %v2065_v17 = vld [vmem:[%s3333_s5] ss:$0 sm:$0xff] }
 0x608   : > { %v1376_v21 = vpop.f32.mrb[8].mxu0 }
 0x609   : > { %v1380_v22 = vmul.f32 0.17677669, %v1376_v21  ;;  %v2177_v23 = vpop.f32.mrb[9].mxu0  ;;  %v2066_v21 = vld [vmem:[%s3335_s27] ss:$0 sm:$0xff] }
 0x60b   : > { %v1381_v24 = vsel %vm3119_vm6, %v1380_v22, -1e+30 }
 0x60c   : > { %v1382_v25 = vsel %vm823_vm2, %v1381_v24, -inf }
 0x60d   : > { %1383 = vmax.xlane.f32.xlu1 %v1382_v25 }
 0x69a   : > { %v1384_v27 = vpop.xlane.xlu1 %1383 }
 0x69b   : > { %v1385_v28 = vsub.f32 %v1381_v24, %v1384_v27 }
 0x69d   : > { %v1386_v29 = vmul.f32 1.442695, %v1385_v28 }
 0x69f   : > { %2351 = vpow2.f32 %v1386_v29 }
 0x6a9   : > { %v2352_v30 = vpop.eup %2351 }
 0x6aa   : > { %v1388_v31 = vsel %vm823_vm2, %v2352_v30, 0.0 }
 0x6ab   : > { %1389 = vadd.xlane.f32.xlu0 %v1388_v31 }
 0x6c1   : > { %1544 = vrot.lane.b32.xlu0 %v3091_v26, %s2676_s8  ;;  %v1469_v26 = vld [vmem:[#allocation15 + $0x10] sm:$0xff] }
 0x6c2   : > { %2184 = vmatpush3.msra.mxu0 %v1469_v26 }
 0x6c3   : > { %2193 = vmatprep.subr.mxu0 %v2672_v1 }
 0x738   : > { %v1390_v33 = vpop.xlane.xlu0 %1389 }
 0x739   : > { %2353 = vrcp.f32 %v1390_v33 }
 0x73c   : > { %v1545_v37 = vpop.permute.xlu0 %1544 }
 0x743   : > { %v2354_v34 = vpop.eup %2353 }
 0x744   : > { %v1392_v36 = vmul.f32 %v2354_v34, %v2352_v30 }
 0x746   : > { %2181 = vmatmul.mubr.msk.f32.vlgmr.msra.gmra.mrb[10].mxu1 %vm823_vm2, %v1392_v36 }
 0x747   : > { %2189 = vmatpush3.xpose.msk.msra.mxu1 %vm823_vm2, %v1547_v32  ;;  %2190 = vmatprep.mubr.msk.f32.mxu1 %vm2671_vm0, %v2672_v1 }
 0x748   : > { %2198 = vmatprep.subr.mxu1 %v2672_v1 }
 0x74a   : > { %2191 = vmatmul.mubr.msk.f32.vlgmr.msra.gmra.mrb[12].mxu1 %vm823_vm2, %v1545_v37 }
 0x74b   : > { %2200 = vmatprep.mubr.msk.f32.mxu1 %vm2671_vm0, %v2672_v1 }
 0x819   : > { %v1465_v38 = vpop.f32.mrb[10].mxu1 }
 0x81a   : > { %v2182_v39 = vpop.f32.mrb[11].mxu1  ;;  %2186 = vmatmul.mubr.msk.f32.vlgmr.msra.gmra.mrb[10].mxu0 %vm823_vm2, %v1465_v38 }
 0x81b   : > { %2195 = vmatprep.mubr.msk.f32.mxu0 %vm2671_vm0, %v2672_v1  ;;  %v1711_v1 = vld [vmem:[#allocation15 + $0x18] sm:$0xff] }
 0x81c   : > { %2199 = vmatpush3.msra.mxu1 %v1711_v1 }
 0x81d   : > { %v1618_v40 = vpop.f32.mrb[12].mxu1 }
 0x81e   : > { %v1622_v41 = vmul.f32 0.17677669, %v1618_v40  ;;  %v2192_v43 = vpop.f32.mrb[13].mxu1 }
 0x820   : > { %v1623_v44 = vsel %vm3119_vm6, %v1622_v41, -1e+30 }
 0x821   : > { %v1624_v45 = vsel %vm823_vm2, %v1623_v44, -inf }
 0x822   : > { %1625 = vmax.xlane.f32.xlu0 %v1624_v45 }
 0x8af   : > { %v1626_v46 = vpop.xlane.xlu0 %1625 }
 0x8b0   : > { %v1627_v47 = vsub.f32 %v1623_v44, %v1626_v46 }
 0x8b2   : > { %v1628_v48 = vmul.f32 1.442695, %v1627_v47 }
 0x8b4   : > { %2355 = vpow2.f32 %v1628_v48 }
 0x8be   : > { %v2356_v49 = vpop.eup %2355 }
 0x8bf   : > { %v1630_v50 = vsel %vm823_vm2, %v2356_v49, 0.0 }
 0x8c0   : > { %1631 = vadd.xlane.f32.xlu1 %v1630_v50 }
 0x8d1   : > { %1635 = vrot.lane.b32.xlu1 %v3115_v35, %s2676_s8  ;;  %v2064_v35 = vld [vmem:[%s3332_s28] ss:$0 sm:$0xff] }
 0x8ed   : > { %v1539_v51 = vpop.f32.mrb[10].mxu0 }
 0x8ee   : > { %v1543_v52 = vadd.f32 %v1539_v51, %v1299_v19  ;;  %v2187_v42 = vpop.f32.mrb[11].mxu0 }
 0x94d   : > { %v1632_v53 = vpop.xlane.xlu1 %1631 }
 0x94e   : > { %2357 = vrcp.f32 %v1632_v53 }
 0x951   : > { %v1636_v54 = vpop.permute.xlu1 %1635 }
 0x952   : > { %2194 = vmatpush3.msra.mxu0 %v1636_v54 }
 0x958   : > { %v2358_v55 = vpop.eup %2357 }
 0x959   : > { %v1634_v56 = vmul.f32 %v2358_v55, %v2356_v49 }
 0x95b   : > { %2196 = vmatmul.mubr.msk.f32.vlgmr.msra.gmra.mrb[12].mxu0 %vm823_vm2, %v1634_v56 }
 0xa2e   : > { %v1707_v57 = vpop.f32.mrb[12].mxu0 }
 0xa2f   : > { %v2197_v58 = vpop.f32.mrb[13].mxu0  ;;  %2201 = vmatmul.mubr.msk.f32.vlgmr.msra.gmra.mrb[14].mxu1 %vm823_vm2, %v1707_v57 }
 0xb02   : > { %v1781_v59 = vpop.f32.mrb[14].mxu1 }
 0xb03   : > { %v1785_v60 = vadd.f32 %v1781_v59, %v1543_v52  ;;  %v2202_v61 = vpop.f32.mrb[15].mxu1 }
 0xb05   : > { %v1793_v62 = vadd.f32 %v2064_v35, %v1785_v60 }
 0xb07   : > { %v1794_v63 = vadd.f32 %v1793_v62, %v3075_v18 }
 0xb09   : > { %v1795_v0 = vsel %vm572_vm1, %v1794_v63, 0.0  ;;  %v1798_v2 = vmul.f32 %v1794_v63, %v1794_v63 }
 0xb0a   : > { %1796 = vadd.xlane.f32.xlu1 %v1795_v0 }
 0xb0b   : > { %v1799_v3 = vsel %vm572_vm1, %v1798_v2, 0.0 }
 0xb0c   : > { %1800 = vadd.xlane.f32.xlu0 %v1799_v3 }
 0xb97   : > { %v1797_v4 = vpop.xlane.xlu1 %1796 }
 0xb98   : > { %v1803_v5 = vmul.f32 0.03125, %v1797_v4 }
 0xb99   : > { %v1801_v7 = vpop.xlane.xlu0 %1800 }
 0xb9a   : > { %v1804_v6 = vmul.f32 %v1803_v5, %v1797_v4  ;;  %v1817_v16 = vsub.f32 %v1794_v63, %v1803_v5 }
 0xb9c   : > { %v1805_v8 = vsub.f32 %v1801_v7, %v1804_v6  ;;  %v1824_v19 = vmul.f32 %v2065_v17, %v1817_v16 }
 0xb9e   : > { %v1806_v9 = vmax.f32 %v1805_v8, 0.0 }
 0xba0   : > { %v1808_v10 = vmul.f32 0.032258064, %v1806_v9 }
 0xba2   : > { %2359 = vrsqrt.f32 %v1808_v10  ;;  %vm1811_vm7 = vcmp.eq.f32.partialorder %v1808_v10, inf  ;;  %v1814_v18 = vand.u32 2147483648, %v1808_v10  ;;  %vm1813_vm8 = vcmp.eq.f32.partialorder %v1808_v10, 0.0 }
 0xbac   : > { %v2360_v11 = vpop.eup %2359 }
 0xbad   : > { %v1810_v12 = vmul.f32 %v2360_v11, %v1808_v10 }
 0xbaf   : > { %v1812_v13 = vsel %vm1811_vm7, %v1808_v10, %v1810_v12 }
 0xbb0   : > { %v1815_v14 = vsel %vm1813_vm8, %v1814_v18, %v1812_v13 }
 0xbb1   : > { %v1825_v15 = vadd.f32 0.001, %v1815_v14 }
 0xbb3   : > { %2361 = vrcp.f32 %v1825_v15 }
 0xbbd   : > { %v2362_v20 = vpop.eup %2361 }
 0xbbe   : > { %v1827_v22 = vmul.f32 %v2362_v20, %v1824_v19 }
 0xbc0   : > { %v1835_v23 = vadd.f32 %v2066_v21, %v1827_v22 }
 0xbc2   : > { %1836 = vst.msk [vmem:[%s558_s12] sm:$0xff] %vm572_vm1, %v1835_v23 }
 0xbc3   : > { %2578 = shalt.err (!%p2575_p5)
}
 0xbc4   : > { %s2579_s21 = scalar_lea.hbm %s3202_s14, 128  ;;  %s2583_s30 = scalar_lea.hbm %s3336_s25, 256 }
 0xbc5   : > { %p2580_p3 = scmp.ne.s32.totalorder %s3202_s14, %s2579_s21  ;;  %p2584_p4 = scmp.lt.u32.totalorder %s3202_s14, %s3336_s25 }
 0xbc6   : > { %p2585_p10 = scmp.lt.u32.totalorder %s2583_s30, %s2579_s21  ;;  %p2587_p2 = scmp.lt.u32.totalorder %s2579_s21, %s3202_s14 }
 0xbc7   : > { %p2581_p6 = pnand %p2580_p3, %p3337_p1 }
 0xbc8   : > { %p2586_p13 = por %p2585_p10, %p2584_p4 }
 0xbc9   : > { %p2582_p0 = pneg %p2581_p6 }
 0xbca   : > { %p2588_p12 = por %p2587_p2, %p2586_p13 }
 0xbcc   : > { %p2589_p8 = pnand %p2588_p12, %p2582_p0 }
 0xbce   : > { %2592 = shalt.err (!%p2589_p8)
}
 0xbcf   : > { %2243 = dma.vmem_to_hbm [thread:$0]  (%p3337_p1), %s3204_s15, 128, %s3202_s14, %s1838_s10  }
 0xbd0 PF: > { %s3338_s29 = sld [smem:[#allocation22_spill]]  ;;  %s3339_s5 = sld [smem:[#allocation28_spill]] }
 0xbd1   : > { %s3340_s1 = sld [smem:[#allocation24_spill]] }
 0xbd6   : > { %s1864_s11 = sand.u32 1, %s3338_s29   ;;  %p3341_p9 = scmp.ne.s32.totalorder %s3339_s5, 0 }
 0xbd7   : > { %p3342_p7 = scmp.ge.s32.totalorder %s3340_s1, 2  ;;  %s1865_s27 = scalar_lea.sflag [#allocation6], %s1864_s11 }
 0xbd9   : > { %p2269_p11 = pnand %p3342_p7, %p3341_p9 }
 0xbdb   : > { %2634 = dma.done.wait (!%p2269_p11), %s1865_s27, 128  }
 0xbdc   : > { %2636 = vsyncadd (!%p2269_p11), %s1865_s27, 4294967168  ;;  %s32_s22 = sadd.s32 1, %s3340_s1   ;;  %s3343_s13 = sld [smem:[#allocation27_spill]] }
 0xbdd   : > { %p29_p5 = scmp.ge.s32.totalorder %s32_s22, 4   ;;  %s3344_s20 = sld [smem:[#allocation23_spill]] }
 0xbde   : > { %s3345_s21 = sld [smem:[#allocation25_spill]]  ;;  %s3346_s17 = smov %s2643_s18 }
 0xbdf   : > { %s3347_s18 = smov %s2647_s19  ;;  %31 = sbr.rel (!%p29_p5) target bundleno = 18 (0x12), region = 156 }
 0xbe2   : > { %s3348_s19 = smov %s3343_s13 }
 0xbe6   :  { %1870 = vsyncpa [#allocation5], 1 }
 0xbe7   :  { %1872 = vsyncpa [#allocation5 + $0x1], 1 }
 0xbe8   :  { %1873 = vsyncpa [#allocation8], 1 }
 0xbe9   :  { %1875 = vsyncpa [#allocation8 + $0x1], 1 }
 0xbea   :  { %1876 = vsyncpa [#allocation11], 1 }
 0xbeb   :  { %1877 = vsyncpa [#allocation14], 1 }
 0xbec   :  { %1878 = vsyncpa [#allocation6], 1 }
 0xbed   :  { %1880 = vsyncpa [#allocation6 + $0x1], 1 }

</bundles_post_ra>
